<compile_context>
chip_gen: v6e
topology: v6e:2x2x1
jax: 0.10.0
libtpu: 0.0.40
codegen_flags: <defaults>
</compile_context>

<pallas_src>
import jax
import jax.numpy as jnp
from jax.experimental import pallas as pl
from jax.experimental.pallas import tpu as pltpu


def _round_up(v, m):
    return -(-v // m) * m


def _model_kernel(x_ref, p_ref, o_ref):
    # x_ref: (tb, 2*S) input-dtype VMEM block.  Rows = batch (dense sublanes),
    #        lanes = flattened (seq, feature) in native order [s0f0,s0f1,s1f0,...].
    # p_ref: (9,) f32 SMEM  [w00,w01,w10,w11, b1_0,b1_1, w2_0,w2_1, b2]
    # o_ref: (tb, 1) f32 VMEM.
    tb, two_s = x_ref.shape            # static
    s = two_s // 2

    xb = x_ref[...].astype(jnp.float32)          # upcast rides idle VALU slots

    # Strided per-row sums over seq: feature 0 = even lanes, feature 1 = odd.
    lane = jax.lax.broadcasted_iota(jnp.int32, (tb, two_s), 1)
    is_f0 = (lane % 2) == 0
    zero = jnp.zeros_like(xb)
    x0 = jnp.sum(jnp.where(is_f0, xb, zero), axis=1, keepdims=True)   # (tb, 1)
    x1 = jnp.sum(jnp.where(is_f0, zero, xb), axis=1, keepdims=True)   # (tb, 1)

    w00 = p_ref[0]
    w01 = p_ref[1]
    w10 = p_ref[2]
    w11 = p_ref[3]
    b10 = p_ref[4]
    b11 = p_ref[5]
    w20 = p_ref[6]
    w21 = p_ref[7]
    b2 = p_ref[8]

    sf = jnp.float32(s)
    # linear1 commuted with the seq-sum:  sum_s(x W1^T + b1) = (sum_s x) W1^T + S*b1
    h0 = x0 * w00 + x1 * w01 + sf * b10
    h1 = x0 * w10 + x1 * w11 + sf * b11

    t0 = jnp.tanh(h0)
    t1 = jnp.tanh(h1)

    # linear2 (out_features = 1), unrolled on the VPU; then squeeze+abs.
    v = (t0 * t0) * w20 + (t1 * t1) * w21 + b2
    o_ref[...] = jnp.abs(v)


def model_forward(x, w1, b1, w2, b2):
    """x: (B, S, 2); w1: (2,2); b1: (2,); w2: (1,2); b2: (1,). Returns (B,) f32."""
    B, S, F = x.shape
    assert F == 2

    # Free, layout-preserving view of the contiguous input (no HBM pass).
    x2d = x.reshape(B, 2 * S)

    # Pad batch rows so the block second-minor dim is a legal (8/16)-multiple.
    BP = _round_up(B, 16)
    if BP != B:
        x2d = jnp.pad(x2d, ((0, BP - B), (0, 0)))

    params = jnp.concatenate(
        [w1.reshape(-1), b1.reshape(-1), w2.reshape(-1), b2.reshape(-1)]
    ).astype(jnp.float32)                                          # (9,) -> SMEM

    # ~2 MiB per input block (lane-padded VMEM footprint), double-buffered by
    # the pipeline; safely inside scoped VMEM on v5e/v6e/v7x.
    esize = x.dtype.itemsize
    lane_bytes = _round_up(2 * S, 128) * esize
    tb = max(16, min(512, (2 * 1024 * 1024) // lane_bytes))
    tb = (tb // 16) * 16
    tb = min(tb, BP)
    nb = pl.cdiv(BP, tb)

    out = pl.pallas_call(
        _model_kernel,
        out_shape=jax.ShapeDtypeStruct((BP, 1), jnp.float32),
        grid=(nb,),
        in_specs=[
            pl.BlockSpec((tb, 2 * S), lambda i: (i, 0)),                 # x tile
            pl.BlockSpec(memory_space=pltpu.MemorySpace.SMEM),           # params
        ],
        out_specs=pl.BlockSpec((tb, 1), lambda i: (i, 0)),
        compiler_params=pltpu.CompilerParams(
            dimension_semantics=("parallel",),        # v7x: 2 TCs split batch
            vmem_limit_bytes=32 * 1024 * 1024,
        ),
        cost_estimate=pl.CostEstimate(
            flops=int(B * (4 * S + 16)),
            transcendentals=int(2 * B),
            bytes_accessed=int(x.size * esize + B * 4 + 9 * 4),
        ),
    )(x2d, params)
    return out[:B, 0]                 # (B,)  == abs(squeeze(linear2(...), dim=1))


def _reference(x, w1, b1, w2, b2):
    h = jnp.einsum("bsd,ed->bse", x, w1) + b1
    v3 = jnp.sum(h, axis=1)
    x2 = jnp.tanh(v3)
    v1 = x2 * x2
    v2 = v1 @ w2.T + b2
    return jnp.abs(v2[:, 0])


if __name__ == "__main__":
    key = jax.random.PRNGKey(0)
    k_x, k_w1, k_b1, k_w2, k_b2 = jax.random.split(key, 5)

    B, S, F = 1024, 8, 2   # small shapes consistent with Linear(2,2)/Linear(2,1)
    x = jax.random.normal(k_x, (B, S, F), dtype=jnp.float32)

    # Deterministic PyTorch-like init: U(-1/sqrt(fan_in), 1/sqrt(fan_in))
    bound1 = 1.0 / jnp.sqrt(2.0)
    w1 = jax.random.uniform(k_w1, (2, 2), jnp.float32, -bound1, bound1)
    b1 = jax.random.uniform(k_b1, (2,), jnp.float32, -bound1, bound1)
    w2 = jax.random.uniform(k_w2, (1, 2), jnp.float32, -bound1, bound1)
    b2 = jax.random.uniform(k_b2, (1,), jnp.float32, -bound1, bound1)

    out = model_forward(x, w1, b1, w2, b2)
    jax.block_until_ready(out)
    ref = _reference(x, w1, b1, w2, b2)
    assert out.shape == (B,)
    assert jnp.allclose(out, ref, atol=1e-5, rtol=1e-5), (out, ref)

    # bf16 input path: bf16 is DMA'd as-is and upcast inside the kernel.
    x_bf = x.astype(jnp.bfloat16)
    out_bf = model_forward(x_bf, w1, b1, w2, b2)
    jax.block_until_ready(out_bf)
    ref_bf = _reference(x_bf.astype(jnp.float32), w1, b1, w2, b2)
    assert jnp.allclose(out_bf, ref_bf, atol=1e-3, rtol=1e-3), (out_bf, ref_bf)

    print("KERNEL_OK")
</pallas_src>

<mosaic_0001>
module attributes {stable_mosaic.version = 11 : i64} {
  func.func @_model_kernel(%arg0: i32, %arg1: memref<512x16xf32, #tpu.memory_space<vmem>>, %arg2: memref<9xf32, #tpu.memory_space<smem>>, %arg3: memref<512x1xf32, #tpu.memory_space<vmem>>) attributes {dimension_semantics = [#tpu.dimension_semantics<parallel>], iteration_bounds = array<i64: 2>, scalar_prefetch = 0 : i64, scratch_operands = 0 : i64, tpu.core_type = #tpu.core_type<tc>, window_params = [{transform_indices = @transform_0, window_bounds = array<i64: 512, 16>}, {transform_indices = @transform_1, window_bounds = array<i64: 9>}, {transform_indices = @transform_2, window_bounds = array<i64: 512, 1>}]} {
    %c0 = arith.constant 0 : index
    %c0_0 = arith.constant 0 : index
    %0 = vector.load %arg1[%c0, %c0_0] : memref<512x16xf32, #tpu.memory_space<vmem>>, vector<512x16xf32>
    %1 = tpu.iota {dimensions = array<i32: 1>} : vector<512x16xi32>
    %c2_i32 = arith.constant 2 : i32
    %c0_i32 = arith.constant 0 : i32
    %2 = arith.cmpi eq, %c2_i32, %c0_i32 : i32
    %c1_i32 = arith.constant 1 : i32
    %3 = arith.select %2, %c1_i32, %c2_i32 : i32
    %4 = vector.broadcast %3 : i32 to vector<512x16xi32>
    %5 = arith.remsi %1, %4 : vector<512x16xi32>
    %c0_i32_1 = arith.constant 0 : i32
    %6 = vector.broadcast %c0_i32_1 : i32 to vector<512x16xi32>
    %7 = arith.cmpi ne, %5, %6 : vector<512x16xi32>
    %c0_i32_2 = arith.constant 0 : i32
    %8 = vector.broadcast %c0_i32_2 : i32 to vector<512x16xi32>
    %9 = arith.cmpi slt, %5, %8 : vector<512x16xi32>
    %c0_i32_3 = arith.constant 0 : i32
    %10 = arith.cmpi slt, %3, %c0_i32_3 : i32
    %11 = vector.broadcast %10 : i1 to vector<512x16xi1>
    %12 = vector.broadcast %11 : vector<512x16xi1> to vector<512x16xi1>
    %13 = arith.xori %9, %12 : vector<512x16xi1>
    %14 = arith.andi %13, %7 : vector<512x16xi1>
    %15 = vector.broadcast %3 : i32 to vector<512x16xi32>
    %16 = arith.addi %5, %15 : vector<512x16xi32>
    %17 = arith.select %14, %16, %5 : vector<512x16xi1>, vector<512x16xi32>
    %c0_i32_4 = arith.constant 0 : i32
    %18 = vector.broadcast %c0_i32_4 : i32 to vector<512x16xi32>
    %19 = arith.cmpi eq, %17, %18 : vector<512x16xi32>
    %cst = arith.constant 0.000000e+00 : f32
    %20 = vector.broadcast %cst : f32 to vector<512x16xf32>
    %21 = arith.select %19, %0, %20 : vector<512x16xi1>, vector<512x16xf32>
    %cst_5 = arith.constant dense<0.000000e+00> : vector<512xf32>
    %22 = vector.multi_reduction <add>, %21, %cst_5 [1] : vector<512x16xf32> to vector<512xf32>
    %23 = vector.shape_cast %22 : vector<512xf32> to vector<512x1xf32>
    %24 = arith.select %19, %20, %0 : vector<512x16xi1>, vector<512x16xf32>
    %cst_6 = arith.constant dense<0.000000e+00> : vector<512xf32>
    %25 = vector.multi_reduction <add>, %24, %cst_6 [1] : vector<512x16xf32> to vector<512xf32>
    %26 = vector.shape_cast %25 : vector<512xf32> to vector<512x1xf32>
    %c0_7 = arith.constant 0 : index
    %27 = memref.load %arg2[%c0_7] : memref<9xf32, #tpu.memory_space<smem>>
    %c1 = arith.constant 1 : index
    %28 = memref.load %arg2[%c1] : memref<9xf32, #tpu.memory_space<smem>>
    %c2 = arith.constant 2 : index
    %29 = memref.load %arg2[%c2] : memref<9xf32, #tpu.memory_space<smem>>
    %c3 = arith.constant 3 : index
    %30 = memref.load %arg2[%c3] : memref<9xf32, #tpu.memory_space<smem>>
    %c4 = arith.constant 4 : index
    %31 = memref.load %arg2[%c4] : memref<9xf32, #tpu.memory_space<smem>>
    %c5 = arith.constant 5 : index
    %32 = memref.load %arg2[%c5] : memref<9xf32, #tpu.memory_space<smem>>
    %c6 = arith.constant 6 : index
    %33 = memref.load %arg2[%c6] : memref<9xf32, #tpu.memory_space<smem>>
    %c7 = arith.constant 7 : index
    %34 = memref.load %arg2[%c7] : memref<9xf32, #tpu.memory_space<smem>>
    %c8 = arith.constant 8 : index
    %35 = memref.load %arg2[%c8] : memref<9xf32, #tpu.memory_space<smem>>
    %36 = vector.broadcast %27 : f32 to vector<512x1xf32>
    %37 = arith.mulf %23, %36 : vector<512x1xf32>
    %38 = vector.broadcast %28 : f32 to vector<512x1xf32>
    %39 = arith.mulf %26, %38 : vector<512x1xf32>
    %40 = arith.addf %37, %39 : vector<512x1xf32>
    %cst_8 = arith.constant 8.000000e+00 : f32
    %41 = arith.mulf %cst_8, %31 : f32
    %42 = vector.broadcast %41 : f32 to vector<512x1xf32>
    %43 = arith.addf %40, %42 : vector<512x1xf32>
    %44 = vector.broadcast %29 : f32 to vector<512x1xf32>
    %45 = arith.mulf %23, %44 : vector<512x1xf32>
    %46 = vector.broadcast %30 : f32 to vector<512x1xf32>
    %47 = arith.mulf %26, %46 : vector<512x1xf32>
    %48 = arith.addf %45, %47 : vector<512x1xf32>
    %cst_9 = arith.constant 8.000000e+00 : f32
    %49 = arith.mulf %cst_9, %32 : f32
    %50 = vector.broadcast %49 : f32 to vector<512x1xf32>
    %51 = arith.addf %48, %50 : vector<512x1xf32>
    %52 = math.tanh %43 : vector<512x1xf32>
    %53 = math.tanh %51 : vector<512x1xf32>
    %54 = arith.mulf %52, %52 : vector<512x1xf32>
    %55 = vector.broadcast %33 : f32 to vector<512x1xf32>
    %56 = arith.mulf %54, %55 : vector<512x1xf32>
    %57 = arith.mulf %53, %53 : vector<512x1xf32>
    %58 = vector.broadcast %34 : f32 to vector<512x1xf32>
    %59 = arith.mulf %57, %58 : vector<512x1xf32>
    %60 = arith.addf %56, %59 : vector<512x1xf32>
    %61 = vector.broadcast %35 : f32 to vector<512x1xf32>
    %62 = arith.addf %60, %61 : vector<512x1xf32>
    %63 = math.absf %62 : vector<512x1xf32>
    %c0_10 = arith.constant 0 : index
    %c0_11 = arith.constant 0 : index
    %64 = vector.load %arg3[%c0_10, %c0_11] : memref<512x1xf32, #tpu.memory_space<vmem>>, vector<512x1xf32>
    tpu.vector_store %arg3[%c0_10, %c0_11], %63 {strides = array<i32>} : memref<512x1xf32, #tpu.memory_space<vmem>>, vector<512x1xf32>,
    return
  }
  func.func @transform_0(%arg0: i32) -> (i32, i32) {
    %c0_i32 = arith.constant 0 : i32
    %c0_i32_0 = arith.constant 0 : i32
    return %arg0, %c0_i32 : i32, i32
  }
  func.func @transform_1(%arg0: i32) -> i32 {
    %c0_i32 = arith.constant 0 : i32
    %c0_i32_0 = arith.constant 0 : i32
    return %c0_i32 : i32
  }
  func.func @transform_2(%arg0: i32) -> (i32, i32) {
    %c0_i32 = arith.constant 0 : i32
    %c0_i32_0 = arith.constant 0 : i32
    return %arg0, %c0_i32 : i32, i32
  }
}

</mosaic_0001>

<bundles_post_ra>
// kernel: tpu_custom_call.1
= control target key start
LH: loop header
LB: loop body
LE: loop exit
PB: predicated region body
PF: predicated region fallthrough
CT: control target
= control target key end

     0   :  { %7 = vsyncpa [#allocation3], 0  ;;  %s2333_s9 = smov 0   ;;  %s4473_s0 = inlined_call_operand.vmem [shape: f32[1024,16], index: 0, kind: input, shape index: {}]   ;;  %s4474_s1 = inlined_call_operand.vmem [shape: f32[9], index: 1, kind: input, shape index: {}]   ;;  %s4475_s2 = inlined_call_operand.vmem [shape: f32[1024,1], index: 2, kind: output, shape index: {}]  }
   0x1 LB: > { %s1994_s10 = sadd.s32 4294967295, %s2315_s9   ;;  %p1996_p0 = scmp.ge.s32.totalorder %s2315_s9, 1  ;;  %s2315_s9 = sphi %s2333_s9, %s13_s9  }
   0x2   : > { %p91_p1 = scmp.lt.s32.totalorder %s2315_s9, 3  ;;  %s104_s13 = sshll.u32 %s4474_s1, 4  ;;  %s105_s13 = int_to_ptr.vmem [resolvable:$true] %s104_s13 }
   0x3   : > { %p2348_p3 = scmp.eq.s32.totalorder %s1994_s10, 0  ;;  %s2290_s16 = scalar_lea.vmem %s105_s13, 16 }
   0x4   : > { %p2344_p2 = pnand %p1996_p0, %p91_p1  ;;  %p2291_p6 = scmp.ne.s32.totalorder %s105_s13, %s2290_s16 }
   0x5   : > { %p2298_p10 = scmp.lt.s32.totalorder %s105_s13, %s105_s13  ;;  %p2299_p11 = scmp.lt.s32.totalorder %s2290_s16, %s2290_s16 }
   0x6   : > { %p2019_p4 = pneg %p2344_p2 }
   0x7   : > { %p2300_p12 = por %p2299_p11, %p2298_p10 }
   0x8   : > { %p2020_p5 = pnand %p2348_p3, %p2019_p4 }
   0xa   : > { %p2292_p7 = pneg %p2020_p5 }
   0xc   : > { %p2293_p8 = pnand %p2292_p7, %p2291_p6 }
   0xe   : > { %p2294_p9 = pneg %p2293_p8 }
  0x10   : > { %p2301_p13 = pnand %p2300_p12, %p2294_p9 }
  0x12   : > { %2304 = shalt.err (!%p2301_p13)
}
  0x13   : > { %s2317_s17 = smov [#allocation2]   ;;  %126 = sbr.rel (%p2344_p2) target bundleno = 572 (0x23c), region = 28 }
  0x14   : > { %2022 = dma.vmem_to_smem (!%p2020_p5), %s105_s13, 16, %s2317_s17, [#allocation3]  }
  0x18   : > { %2310 = dma.done.wait (%p2348_p3), [#allocation3], 16  }
  0x19   : > { %2312 = vsyncadd (%p2348_p3), [#allocation3], 4294967280 }
  0x1a   : > { %132 = sfence }
  0x1b   : > { %s2001_s18 = sshll.u32 %s1994_s10, 6  ;;  %v225_v0 = vlaneseq  ;;  %vm304_vm1 = vcmask 130048   ;;  %s753_s23 = sld [smem:[#allocation2]]  ;;  %vm1861_vm2 = vcmask 7168  }
  0x1c   : > { %p150_p0 = scmp.lt.s32.totalorder %s2001_s18, 127  ;;  %s2006_s24 = sld [smem:[#allocation2 + $0x2]] }
  0x1d   : > { %v226_v1 = vand.u32 127, %v225_v0  ;;  %s3124_s25 = sld [smem:[#allocation2 + $0x4]] }
  0x1e   : > { %s4714_s18 = smov (!%p150_p0, %s2001_s18), 127  ;;  %s3132_s26 = sld [smem:[#allocation2 + $0x1]] }
  0x1f   : > { %v231_v2 = vand.u32 1, %v226_v1  ;;  %s2002_s19 = sshll.u32 %s4714_s18, 3  ;;  %s3134_s27 = sld [smem:[#allocation2 + $0x3]] }
  0x20   : > { %s2370_s22 = scalar_lea.vmem %s4473_s0, %s2002_s19  ;;  %s3166_s28 = sld [smem:[#allocation2 + $0x5]] }
  0x21   : > { %vm2372_vm0 = vcmp.eq.s32.totalorder %v231_v2, 0  ;;  %v2377_v4 = vld [vmem:[%s2370_s22 + $0x10] sm:$0xff]  ;;  %v2380_v5 = vld [vmem:[%s2370_s22] sm:$0xff]  ;;  %v2383_v6 = vld [vmem:[%s2370_s22 + $0x18] sm:$0xff]  ;;  %s3178_s29 = sld [smem:[#allocation2 + $0x6]]  ;;  %s3834_s8 = scalar_lea.vmem %s4475_s2, %s2002_s19 }
  0x22   : > { %v242_v7 = vsel %vm2372_vm0, %v2377_v4, 0.0  ;;  %v240_v8 = vsel %vm2372_vm0, %v2380_v5, 0.0  ;;  %v243_v9 = vsel %vm2372_vm0, %v2383_v6, 0.0  ;;  %v2395_v10 = vld [vmem:[%s2370_s22 + $0x8] sm:$0xff]  ;;  %v2406_v15 = vld [vmem:[%s2370_s22 + $0x20] sm:$0xff]  ;;  %v2417_v20 = vld [vmem:[%s2370_s22 + $0x38] sm:$0xff] }
  0x23   : > { %v311_v11 = vsel %vm304_vm1, %v242_v7, 0.0  ;;  %v305_v12 = vsel %vm304_vm1, %v240_v8, 0.0  ;;  %v241_v13 = vsel %vm2372_vm0, %v2395_v10, 0.0  ;;  %v2403_v14 = vld [vmem:[%s2370_s22 + $0x28] sm:$0xff]  ;;  %v314_v16 = vsel %vm304_vm1, %v243_v9, 0.0  ;;  %v2420_v21 = vld [vmem:[%s2370_s22 + $0x30] sm:$0xff] }
  0x24   : > { %312 = vadd.xlane.f32.xlu1 %v311_v11  ;;  %306 = vadd.xlane.f32.xlu0 %v305_v12  ;;  %v308_v17 = vsel %vm304_vm1, %v241_v13, 0.0  ;;  %v245_v18 = vsel %vm2372_vm0, %v2403_v14, 0.0  ;;  %v244_v19 = vsel %vm2372_vm0, %v2406_v15, 0.0  ;;  %v247_v24 = vsel %vm2372_vm0, %v2417_v20, 0.0  ;;  %v2431_v26 = vld [vmem:[%s2370_s22 + $0x48] sm:$0xff]  ;;  %v2434_v27 = vld [vmem:[%s2370_s22 + $0x40] sm:$0xff] }
  0x25   : > { %v320_v22 = vsel %vm304_vm1, %v245_v18, 0.0  ;;  %v317_v23 = vsel %vm304_vm1, %v244_v19, 0.0  ;;  %v246_v25 = vsel %vm2372_vm0, %v2420_v21, 0.0  ;;  %v326_v28 = vsel %vm304_vm1, %v247_v24, 0.0  ;;  %v2445_v32 = vld [vmem:[%s2370_s22 + $0x58] sm:$0xff]  ;;  %v2448_v33 = vld [vmem:[%s2370_s22 + $0x50] sm:$0xff] }
  0x26   : > { %v323_v29 = vsel %vm304_vm1, %v246_v25, 0.0  ;;  %v249_v30 = vsel %vm2372_vm0, %v2431_v26, 0.0  ;;  %v248_v31 = vsel %vm2372_vm0, %v2434_v27, 0.0  ;;  %v251_v36 = vsel %vm2372_vm0, %v2445_v32, 0.0  ;;  %v2459_v38 = vld [vmem:[%s2370_s22 + $0x68] sm:$0xff]  ;;  %v2462_v39 = vld [vmem:[%s2370_s22 + $0x60] sm:$0xff] }
  0x27   : > { %v332_v34 = vsel %vm304_vm1, %v249_v30, 0.0  ;;  %v329_v35 = vsel %vm304_vm1, %v248_v31, 0.0  ;;  %v250_v37 = vsel %vm2372_vm0, %v2448_v33, 0.0  ;;  %v338_v40 = vsel %vm304_vm1, %v251_v36, 0.0  ;;  %v2473_v44 = vld [vmem:[%s2370_s22 + $0x78] sm:$0xff]  ;;  %v2476_v45 = vld [vmem:[%s2370_s22 + $0x70] sm:$0xff] }
  0x28   : > { %315 = vadd.xlane.f32.xlu1 %v314_v16  ;;  %309 = vadd.xlane.f32.xlu0 %v308_v17  ;;  %v335_v41 = vsel %vm304_vm1, %v250_v37, 0.0  ;;  %v253_v42 = vsel %vm2372_vm0, %v2459_v38, 0.0  ;;  %v252_v43 = vsel %vm2372_vm0, %v2462_v39, 0.0  ;;  %v255_v48 = vsel %vm2372_vm0, %v2473_v44, 0.0  ;;  %v2487_v50 = vld [vmem:[%s2370_s22 + $0x88] sm:$0xff]  ;;  %v2490_v51 = vld [vmem:[%s2370_s22 + $0x80] sm:$0xff] }
  0x29   : > { %v344_v46 = vsel %vm304_vm1, %v253_v42, 0.0  ;;  %v341_v47 = vsel %vm304_vm1, %v252_v43, 0.0  ;;  %v254_v49 = vsel %vm2372_vm0, %v2476_v45, 0.0  ;;  %v350_v52 = vsel %vm304_vm1, %v255_v48, 0.0  ;;  %v2501_v56 = vld [vmem:[%s2370_s22 + $0x98] sm:$0xff]  ;;  %v2504_v57 = vld [vmem:[%s2370_s22 + $0x90] sm:$0xff] }
  0x2a   : > { %v347_v53 = vsel %vm304_vm1, %v254_v49, 0.0  ;;  %v257_v54 = vsel %vm2372_vm0, %v2487_v50, 0.0  ;;  %v256_v55 = vsel %vm2372_vm0, %v2490_v51, 0.0  ;;  %v259_v60 = vsel %vm2372_vm0, %v2501_v56, 0.0  ;;  %v2515_v62 = vld [vmem:[%s2370_s22 + $0xa8] sm:$0xff]  ;;  %v2518_v63 = vld [vmem:[%s2370_s22 + $0xa0] sm:$0xff] }
  0x2b   : > { %v356_v58 = vsel %vm304_vm1, %v257_v54, 0.0  ;;  %v353_v59 = vsel %vm304_vm1, %v256_v55, 0.0  ;;  %v258_v61 = vsel %vm2372_vm0, %v2504_v57, 0.0  ;;  %v362_v0 = vsel %vm304_vm1, %v259_v60, 0.0  ;;  %v2529_v8 = vld [vmem:[%s2370_s22 + $0xb8] sm:$0xff]  ;;  %v2532_v9 = vld [vmem:[%s2370_s22 + $0xb0] sm:$0xff] }
  0x2c   : > { %321 = vadd.xlane.f32.xlu1 %v320_v22  ;;  %318 = vadd.xlane.f32.xlu0 %v317_v23  ;;  %v359_v1 = vsel %vm304_vm1, %v258_v61, 0.0  ;;  %v261_v2 = vsel %vm2372_vm0, %v2515_v62, 0.0  ;;  %v260_v7 = vsel %vm2372_vm0, %v2518_v63, 0.0  ;;  %v263_v13 = vsel %vm2372_vm0, %v2529_v8, 0.0  ;;  %v2543_v17 = vld [vmem:[%s2370_s22 + $0xc8] sm:$0xff]  ;;  %v2546_v18 = vld [vmem:[%s2370_s22 + $0xc0] sm:$0xff] }
  0x2d   : > { %v368_v11 = vsel %vm304_vm1, %v261_v2, 0.0  ;;  %v365_v12 = vsel %vm304_vm1, %v260_v7, 0.0  ;;  %v262_v16 = vsel %vm2372_vm0, %v2532_v9, 0.0  ;;  %v374_v19 = vsel %vm304_vm1, %v263_v13, 0.0  ;;  %v2557_v25 = vld [vmem:[%s2370_s22 + $0xd8] sm:$0xff]  ;;  %v2574_v36 = vld [vmem:[%s2370_s22 + $0xe0] sm:$0xff] }
  0x2e   : > { %v371_v22 = vsel %vm304_vm1, %v262_v16, 0.0  ;;  %v265_v23 = vsel %vm2372_vm0, %v2543_v17, 0.0  ;;  %v264_v24 = vsel %vm2372_vm0, %v2546_v18, 0.0  ;;  %v267_v31 = vsel %vm2372_vm0, %v2557_v25, 0.0  ;;  %v2585_v43 = vld [vmem:[%s2370_s22 + $0xf8] sm:$0xff]  ;;  %v2602_v54 = vld [vmem:[%s2370_s22 + $0x100] sm:$0xff] }
  0x2f   : > { %v377_v30 = vsel %vm304_vm1, %v264_v24, 0.0  ;;  %v386_v37 = vsel %vm304_vm1, %v267_v31, 0.0  ;;  %v268_v42 = vsel %vm2372_vm0, %v2574_v36, 0.0  ;;  %v271_v49 = vsel %vm2372_vm0, %v2585_v43, 0.0  ;;  %v2613_v61 = vld [vmem:[%s2370_s22 + $0x118] sm:$0xff]  ;;  %v2630_v13 = vld [vmem:[%s2370_s22 + $0x120] sm:$0xff] }
  0x30   : > { %327 = vadd.xlane.f32.xlu1 %v326_v28  ;;  %324 = vadd.xlane.f32.xlu0 %v323_v29  ;;  %v2560_v28 = vld [vmem:[%s2370_s22 + $0xd0] sm:$0xff]  ;;  %v380_v29 = vsel %vm304_vm1, %v265_v23, 0.0  ;;  %v389_v48 = vsel %vm304_vm1, %v268_v42, 0.0  ;;  %v398_v55 = vsel %vm304_vm1, %v271_v49, 0.0  ;;  %v272_v60 = vsel %vm2372_vm0, %v2602_v54, 0.0  ;;  %v2641_v24 = vld [vmem:[%s2370_s22 + $0x138] sm:$0xff] }
  0x31   : > { %v401_v2 = vsel %vm304_vm1, %v272_v60, 0.0  ;;  %v275_v7 = vsel %vm2372_vm0, %v2613_v61, 0.0  ;;  %v276_v23 = vsel %vm2372_vm0, %v2630_v13, 0.0  ;;  %s956_s30 = smul.f32 8.0, %s3124_s25  ;;  %s3287_s3 = sld [smem:[#allocation2 + $0x7]] }
  0x32   : > { %v410_v16 = vsel %vm304_vm1, %v275_v7, 0.0  ;;  %v413_v31 = vsel %vm304_vm1, %v276_v23, 0.0  ;;  %v2686_v7 = vld [vmem:[%s2370_s22 + $0x160] sm:$0xff]  ;;  %v2697_v23 = vld [vmem:[%s2370_s22 + $0x178] sm:$0xff]  ;;  %s1216_s4 = smul.f32 8.0, %s3166_s28  ;;  %s3357_s5 = sld [smem:[#allocation2 + $0x8]] }
  0x34   : > { %333 = vadd.xlane.f32.xlu1 %v332_v34  ;;  %330 = vadd.xlane.f32.xlu0 %v329_v35  ;;  %v266_v34 = vsel %vm2372_vm0, %v2560_v28, 0.0  ;;  %v2571_v35 = vld [vmem:[%s2370_s22 + $0xe8] sm:$0xff] }
  0x38   : > { %339 = vadd.xlane.f32.xlu1 %v338_v40  ;;  %336 = vadd.xlane.f32.xlu0 %v335_v41  ;;  %v383_v40 = vsel %vm304_vm1, %v266_v34, 0.0  ;;  %v269_v41 = vsel %vm2372_vm0, %v2571_v35, 0.0  ;;  %v279_v34 = vsel %vm2372_vm0, %v2641_v24, 0.0 }
  0x39   : > { %v422_v42 = vsel %vm304_vm1, %v279_v34, 0.0 }
  0x3c   : > { %345 = vadd.xlane.f32.xlu1 %v344_v46  ;;  %342 = vadd.xlane.f32.xlu0 %v341_v47  ;;  %v2588_v46 = vld [vmem:[%s2370_s22 + $0xf0] sm:$0xff]  ;;  %v392_v47 = vsel %vm304_vm1, %v269_v41, 0.0  ;;  %v2658_v41 = vld [vmem:[%s2370_s22 + $0x140] sm:$0xff] }
  0x3d   : > { %v280_v49 = vsel %vm2372_vm0, %v2658_v41, 0.0 }
  0x40   : > { %351 = vadd.xlane.f32.xlu1 %v350_v52  ;;  %348 = vadd.xlane.f32.xlu0 %v347_v53  ;;  %v270_v52 = vsel %vm2372_vm0, %v2588_v46, 0.0  ;;  %v2599_v53 = vld [vmem:[%s2370_s22 + $0x108] sm:$0xff] }
  0x44   : > { %357 = vadd.xlane.f32.xlu1 %v356_v58  ;;  %354 = vadd.xlane.f32.xlu0 %v353_v59  ;;  %v395_v58 = vsel %vm304_vm1, %v270_v52, 0.0  ;;  %v273_v59 = vsel %vm2372_vm0, %v2599_v53, 0.0  ;;  %v2669_v52 = vld [vmem:[%s2370_s22 + $0x158] sm:$0xff] }
  0x45   : > { %v283_v60 = vsel %vm2372_vm0, %v2669_v52, 0.0 }
  0x48   : > { %363 = vadd.xlane.f32.xlu1 %v362_v0  ;;  %360 = vadd.xlane.f32.xlu0 %v359_v1  ;;  %v2616_v0 = vld [vmem:[%s2370_s22 + $0x110] sm:$0xff]  ;;  %v404_v1 = vsel %vm304_vm1, %v273_v59, 0.0  ;;  %v425_v59 = vsel %vm304_vm1, %v280_v49, 0.0 }
  0x4c   : > { %369 = vadd.xlane.f32.xlu1 %v368_v11  ;;  %366 = vadd.xlane.f32.xlu0 %v365_v12  ;;  %v274_v11 = vsel %vm2372_vm0, %v2616_v0, 0.0  ;;  %v2627_v12 = vld [vmem:[%s2370_s22 + $0x128] sm:$0xff] }
  0x50   : > { %375 = vadd.xlane.f32.xlu1 %v374_v19  ;;  %372 = vadd.xlane.f32.xlu0 %v371_v22  ;;  %v407_v19 = vsel %vm304_vm1, %v274_v11, 0.0  ;;  %v277_v22 = vsel %vm2372_vm0, %v2627_v12, 0.0  ;;  %v434_v11 = vsel %vm304_vm1, %v283_v60, 0.0 }
  0x54   : > { %381 = vadd.xlane.f32.xlu1 %v380_v29  ;;  %378 = vadd.xlane.f32.xlu0 %v377_v30  ;;  %v2644_v29 = vld [vmem:[%s2370_s22 + $0x130] sm:$0xff]  ;;  %v416_v30 = vsel %vm304_vm1, %v277_v22, 0.0  ;;  %v284_v22 = vsel %vm2372_vm0, %v2686_v7, 0.0 }
  0x55   : > { %v437_v34 = vsel %vm304_vm1, %v284_v22, 0.0 }
  0x58   : > { %387 = vadd.xlane.f32.xlu1 %v386_v37  ;;  %384 = vadd.xlane.f32.xlu0 %v383_v40  ;;  %v278_v37 = vsel %vm2372_vm0, %v2644_v29, 0.0  ;;  %v2655_v40 = vld [vmem:[%s2370_s22 + $0x148] sm:$0xff] }
  0x5c   : > { %393 = vadd.xlane.f32.xlu1 %v392_v47  ;;  %390 = vadd.xlane.f32.xlu0 %v389_v48  ;;  %v419_v47 = vsel %vm304_vm1, %v278_v37, 0.0  ;;  %v281_v48 = vsel %vm2372_vm0, %v2655_v40, 0.0  ;;  %v287_v37 = vsel %vm2372_vm0, %v2697_v23, 0.0 }
  0x5d   : > { %v446_v49 = vsel %vm304_vm1, %v287_v37, 0.0  ;;  %v2742_v37 = vld [vmem:[%s2370_s22 + $0x1a0] sm:$0xff] }
  0x5e   : > { %4501 = vst [vmem:[#allocation7_spill] sm:$0xff] %v2742_v37 }
  0x60   : > { %399 = vadd.xlane.f32.xlu1 %v398_v55  ;;  %396 = vadd.xlane.f32.xlu0 %v395_v58  ;;  %v2672_v55 = vld [vmem:[%s2370_s22 + $0x150] sm:$0xff]  ;;  %v428_v58 = vsel %vm304_vm1, %v281_v48, 0.0  ;;  %v2714_v48 = vld [vmem:[%s2370_s22 + $0x180] sm:$0xff] }
  0x61   : > { %v288_v60 = vsel %vm2372_vm0, %v2714_v48, 0.0 }
  0x64   : > { %405 = vadd.xlane.f32.xlu1 %v404_v1  ;;  %402 = vadd.xlane.f32.xlu0 %v401_v2  ;;  %v282_v1 = vsel %vm2372_vm0, %v2672_v55, 0.0  ;;  %v2683_v2 = vld [vmem:[%s2370_s22 + $0x168] sm:$0xff] }
  0x68   : > { %411 = vadd.xlane.f32.xlu1 %v410_v16  ;;  %408 = vadd.xlane.f32.xlu0 %v407_v19  ;;  %v431_v16 = vsel %vm304_vm1, %v282_v1, 0.0  ;;  %v285_v19 = vsel %vm2372_vm0, %v2683_v2, 0.0  ;;  %v2725_v1 = vld [vmem:[%s2370_s22 + $0x198] sm:$0xff] }
  0x69   : > { %v291_v22 = vsel %vm2372_vm0, %v2725_v1, 0.0 }
  0x6c   : > { %417 = vadd.xlane.f32.xlu1 %v416_v30  ;;  %414 = vadd.xlane.f32.xlu0 %v413_v31  ;;  %v2700_v30 = vld [vmem:[%s2370_s22 + $0x170] sm:$0xff]  ;;  %v440_v31 = vsel %vm304_vm1, %v285_v19, 0.0  ;;  %v449_v19 = vsel %vm304_vm1, %v288_v60, 0.0  ;;  %v2753_v60 = vld [vmem:[%s2370_s22 + $0x1b8] sm:$0xff] }
  0x6d   : > { %4502 = vst [vmem:[#allocation8_spill] sm:$0xff] %v2753_v60 }
  0x70   : > { %423 = vadd.xlane.f32.xlu1 %v422_v42  ;;  %420 = vadd.xlane.f32.xlu0 %v419_v47  ;;  %v286_v42 = vsel %vm2372_vm0, %v2700_v30, 0.0  ;;  %v2711_v47 = vld [vmem:[%s2370_s22 + $0x188] sm:$0xff] }
  0x74   : > { %429 = vadd.xlane.f32.xlu1 %v428_v58  ;;  %426 = vadd.xlane.f32.xlu0 %v425_v59  ;;  %v443_v58 = vsel %vm304_vm1, %v286_v42, 0.0  ;;  %v289_v59 = vsel %vm2372_vm0, %v2711_v47, 0.0  ;;  %v458_v42 = vsel %vm304_vm1, %v291_v22, 0.0  ;;  %v295_v22 = vsel %vm2372_vm0, %v2753_v60, 0.0  ;;  %v2784_v60 = vld [vmem:[%s2370_s22 + $0x1d0] sm:$0xff] }
  0x75   : > { %4507 = vst [vmem:[#allocation13_spill] sm:$0xff] %v2784_v60 }
  0x78   : > { %435 = vadd.xlane.f32.xlu1 %v434_v11  ;;  %432 = vadd.xlane.f32.xlu0 %v431_v16  ;;  %v2728_v11 = vld [vmem:[%s2370_s22 + $0x190] sm:$0xff]  ;;  %v452_v16 = vsel %vm304_vm1, %v289_v59, 0.0  ;;  %v292_v59 = vsel %vm2372_vm0, %v2742_v37, 0.0  ;;  %v2767_v37 = vld [vmem:[%s2370_s22 + $0x1c8] sm:$0xff] }
  0x79   : > { %4499 = vst [vmem:[#allocation5_spill] sm:$0xff] %v2728_v11  ;;  %4504 = vst [vmem:[#allocation10_spill] sm:$0xff] %v2767_v37 }
  0x7c   : > { %441 = vadd.xlane.f32.xlu1 %v440_v31  ;;  %438 = vadd.xlane.f32.xlu0 %v437_v34  ;;  %v290_v31 = vsel %vm2372_vm0, %v2728_v11, 0.0  ;;  %v2739_v34 = vld [vmem:[%s2370_s22 + $0x1a8] sm:$0xff]  ;;  %v2756_v11 = vld [vmem:[%s2370_s22 + $0x1b0] sm:$0xff] }
  0x7d   : > { %4500 = vst [vmem:[#allocation6_spill] sm:$0xff] %v2739_v34  ;;  %4503 = vst [vmem:[#allocation9_spill] sm:$0xff] %v2756_v11 }
  0x80   : > { %447 = vadd.xlane.f32.xlu1 %v446_v49  ;;  %444 = vadd.xlane.f32.xlu0 %v443_v58  ;;  %v455_v49 = vsel %vm304_vm1, %v290_v31, 0.0  ;;  %v293_v58 = vsel %vm2372_vm0, %v2739_v34, 0.0  ;;  %v294_v31 = vsel %vm2372_vm0, %v2756_v11, 0.0  ;;  %v2770_v34 = vld [vmem:[%s2370_s22 + $0x1c0] sm:$0xff]  ;;  %v2781_v11 = vld [vmem:[%s2370_s22 + $0x1d8] sm:$0xff] }
  0x81   : > { %4505 = vst [vmem:[#allocation11_spill] sm:$0xff] %v2770_v34  ;;  %4506 = vst [vmem:[#allocation12_spill] sm:$0xff] %v2781_v11 }
  0x84   : > { %453 = vadd.xlane.f32.xlu1 %v452_v16  ;;  %450 = vadd.xlane.f32.xlu0 %v449_v19  ;;  %v464_v16 = vsel %vm304_vm1, %v293_v58, 0.0  ;;  %v461_v19 = vsel %vm304_vm1, %v292_v59, 0.0  ;;  %v297_v58 = vsel %vm2372_vm0, %v2767_v37, 0.0  ;;  %v296_v59 = vsel %vm2372_vm0, %v2770_v34, 0.0  ;;  %v2795_v34 = vld [vmem:[%s2370_s22 + $0x1e8] sm:$0xff]  ;;  %v2798_v37 = vld [vmem:[%s2370_s22 + $0x1e0] sm:$0xff] }
  0x85   : > { %4508 = vst [vmem:[#allocation14_spill] sm:$0xff] %v2795_v34  ;;  %4509 = vst [vmem:[#allocation15_spill] sm:$0xff] %v2798_v37 }
  0x88   : > { %459 = vadd.xlane.f32.xlu1 %v458_v42  ;;  %456 = vadd.xlane.f32.xlu0 %v455_v49  ;;  %v470_v42 = vsel %vm304_vm1, %v295_v22, 0.0  ;;  %v467_v49 = vsel %vm304_vm1, %v294_v31, 0.0  ;;  %v299_v22 = vsel %vm2372_vm0, %v2781_v11, 0.0  ;;  %v298_v31 = vsel %vm2372_vm0, %v2784_v60, 0.0  ;;  %v2809_v11 = vld [vmem:[%s2370_s22 + $0x1f8] sm:$0xff]  ;;  %v2812_v60 = vld [vmem:[%s2370_s22 + $0x1f0] sm:$0xff] }
  0x8c   : > { %465 = vadd.xlane.f32.xlu1 %v464_v16  ;;  %462 = vadd.xlane.f32.xlu0 %v461_v19  ;;  %v476_v16 = vsel %vm304_vm1, %v297_v58, 0.0  ;;  %v473_v19 = vsel %vm304_vm1, %v296_v59, 0.0  ;;  %v301_v58 = vsel %vm2372_vm0, %v2795_v34, 0.0  ;;  %v300_v59 = vsel %vm2372_vm0, %v2798_v37, 0.0 }
  0x90   : > { %471 = vadd.xlane.f32.xlu1 %v470_v42  ;;  %468 = vadd.xlane.f32.xlu0 %v467_v49  ;;  %v482_v42 = vsel %vm304_vm1, %v299_v22, 0.0  ;;  %v479_v49 = vsel %vm304_vm1, %v298_v31, 0.0  ;;  %v303_v22 = vsel %vm2372_vm0, %v2809_v11, 0.0  ;;  %v302_v31 = vsel %vm2372_vm0, %v2812_v60, 0.0 }
  0x91   : > { %v494_v37 = vsel %vm304_vm1, %v303_v22, 0.0  ;;  %v491_v34 = vsel %vm304_vm1, %v302_v31, 0.0  ;;  %v504_v22 = vsel %vm2372_vm0, 0.0, %v2417_v20  ;;  %v503_v31 = vsel %vm2372_vm0, 0.0, %v2420_v21 }
  0x92   : > { %v505_v20 = vsel %vm2372_vm0, 0.0, %v2434_v27 }
  0x94   : > { %477 = vadd.xlane.f32.xlu1 %v476_v16  ;;  %474 = vadd.xlane.f32.xlu0 %v473_v19  ;;  %v488_v16 = vsel %vm304_vm1, %v301_v58, 0.0  ;;  %v485_v19 = vsel %vm304_vm1, %v300_v59, 0.0 }
  0x98   : > { %483 = vadd.xlane.f32.xlu1 %v482_v42  ;;  %480 = vadd.xlane.f32.xlu0 %v479_v49  ;;  %v498_v42 = vsel %vm2372_vm0, 0.0, %v2395_v10  ;;  %v497_v49 = vsel %vm2372_vm0, 0.0, %v2380_v5 }
  0x99   : > { %v564_v58 = vsel %vm304_vm1, %v498_v42, 0.0  ;;  %v561_v59 = vsel %vm304_vm1, %v497_v49, 0.0  ;;  %v579_v49 = vsel %vm304_vm1, %v503_v31, 0.0 }
  0x9c   : > { %489 = vadd.xlane.f32.xlu1 %v488_v16  ;;  %486 = vadd.xlane.f32.xlu0 %v485_v19  ;;  %v500_v16 = vsel %vm2372_vm0, 0.0, %v2383_v6  ;;  %v499_v19 = vsel %vm2372_vm0, 0.0, %v2377_v4 }
  0x9d   : > { %v570_v10 = vsel %vm304_vm1, %v500_v16, 0.0  ;;  %v567_v5 = vsel %vm304_vm1, %v499_v19, 0.0  ;;  %v585_v19 = vsel %vm304_vm1, %v505_v20, 0.0 }
  0xa0   : > { %495 = vadd.xlane.f32.xlu1 %v494_v37  ;;  %492 = vadd.xlane.f32.xlu0 %v491_v34  ;;  %v502_v34 = vsel %vm2372_vm0, 0.0, %v2403_v14  ;;  %v501_v37 = vsel %vm2372_vm0, 0.0, %v2406_v15  ;;  %v582_v15 = vsel %vm304_vm1, %v504_v22, 0.0 }
  0xa1   : > { %v576_v6 = vsel %vm304_vm1, %v502_v34, 0.0  ;;  %v573_v4 = vsel %vm304_vm1, %v501_v37, 0.0 }
  0xa4   : > { %565 = vadd.xlane.f32.xlu1 %v564_v58  ;;  %562 = vadd.xlane.f32.xlu0 %v561_v59  ;;  %v506_v58 = vsel %vm2372_vm0, 0.0, %v2431_v26  ;;  %v507_v26 = vsel %vm2372_vm0, 0.0, %v2448_v33 }
  0xa5   : > { %v588_v16 = vsel %vm304_vm1, %v506_v58, 0.0  ;;  %v591_v37 = vsel %vm304_vm1, %v507_v26, 0.0 }
  0xa8   : > { %571 = vadd.xlane.f32.xlu1 %v570_v10  ;;  %568 = vadd.xlane.f32.xlu0 %v567_v5  ;;  %v508_v10 = vsel %vm2372_vm0, 0.0, %v2445_v32  ;;  %v509_v32 = vsel %vm2372_vm0, 0.0, %v2462_v39 }
  0xa9   : > { %v594_v34 = vsel %vm304_vm1, %v508_v10, 0.0  ;;  %v597_v31 = vsel %vm304_vm1, %v509_v32, 0.0 }
  0xac   : > { %577 = vadd.xlane.f32.xlu1 %v576_v6  ;;  %574 = vadd.xlane.f32.xlu0 %v573_v4  ;;  %v510_v6 = vsel %vm2372_vm0, 0.0, %v2459_v38  ;;  %v511_v38 = vsel %vm2372_vm0, 0.0, %v2476_v45 }
  0xad   : > { %v2854_v14 = vpop.xlane.xlu1 %312  ;;  %v2856_v42 = vpop.xlane.xlu0 %306  ;;  %v600_v22 = vsel %vm304_vm1, %v510_v6, 0.0  ;;  %v603_v20 = vsel %vm304_vm1, %v511_v38, 0.0 }
  0xb0   : > { %583 = vadd.xlane.f32.xlu1 %v582_v15  ;;  %580 = vadd.xlane.f32.xlu0 %v579_v49  ;;  %v512_v15 = vsel %vm2372_vm0, 0.0, %v2473_v44  ;;  %v513_v44 = vsel %vm2372_vm0, 0.0, %v2490_v51 }
  0xb1   : > { %v2866_v21 = vpop.xlane.xlu1 %315  ;;  %v2868_v59 = vpop.xlane.xlu0 %309  ;;  %v606_v58 = vsel %vm304_vm1, %v512_v15, 0.0  ;;  %v609_v26 = vsel %vm304_vm1, %v513_v44, 0.0 }
  0xb4   : > { %589 = vadd.xlane.f32.xlu1 %v588_v16  ;;  %586 = vadd.xlane.f32.xlu0 %v585_v19  ;;  %v514_v16 = vsel %vm2372_vm0, 0.0, %v2487_v50  ;;  %v515_v50 = vsel %vm2372_vm0, 0.0, %v2504_v57 }
  0xb5   : > { %v2878_v27 = vpop.xlane.xlu1 %321  ;;  %v2880_v5 = vpop.xlane.xlu0 %318  ;;  %v612_v10 = vsel %vm304_vm1, %v514_v16, 0.0  ;;  %v615_v32 = vsel %vm304_vm1, %v515_v50, 0.0 }
  0xb8   : > { %595 = vadd.xlane.f32.xlu1 %v594_v34  ;;  %592 = vadd.xlane.f32.xlu0 %v591_v37  ;;  %v516_v34 = vsel %vm2372_vm0, 0.0, %v2501_v56  ;;  %v517_v56 = vsel %vm2372_vm0, 0.0, %v2518_v63 }
  0xb9   : > { %v2890_v33 = vpop.xlane.xlu1 %327  ;;  %v2892_v4 = vpop.xlane.xlu0 %324  ;;  %v618_v6 = vsel %vm304_vm1, %v516_v34, 0.0  ;;  %v621_v38 = vsel %vm304_vm1, %v517_v56, 0.0 }
  0xbc   : > { %601 = vadd.xlane.f32.xlu1 %v600_v22  ;;  %598 = vadd.xlane.f32.xlu0 %v597_v31  ;;  %v518_v22 = vsel %vm2372_vm0, 0.0, %v2515_v62  ;;  %v519_v62 = vsel %vm2372_vm0, 0.0, %v2532_v9 }
  0xbd   : > { %v2902_v39 = vpop.xlane.xlu1 %333  ;;  %v2904_v49 = vpop.xlane.xlu0 %330  ;;  %v624_v15 = vsel %vm304_vm1, %v518_v22, 0.0  ;;  %v627_v44 = vsel %vm304_vm1, %v519_v62, 0.0 }
  0xc0   : > { %607 = vadd.xlane.f32.xlu1 %v606_v58  ;;  %604 = vadd.xlane.f32.xlu0 %v603_v20  ;;  %v520_v58 = vsel %vm2372_vm0, 0.0, %v2529_v8  ;;  %v521_v8 = vsel %vm2372_vm0, 0.0, %v2546_v18 }
  0xc1   : > { %v2914_v45 = vpop.xlane.xlu1 %339  ;;  %v2916_v19 = vpop.xlane.xlu0 %336  ;;  %v630_v16 = vsel %vm304_vm1, %v520_v58, 0.0  ;;  %v633_v50 = vsel %vm304_vm1, %v521_v8, 0.0 }
  0xc4   : > { %613 = vadd.xlane.f32.xlu1 %v612_v10  ;;  %610 = vadd.xlane.f32.xlu0 %v609_v26  ;;  %v522_v10 = vsel %vm2372_vm0, 0.0, %v2543_v17  ;;  %v523_v17 = vsel %vm2372_vm0, 0.0, %v2560_v28 }
  0xc5   : > { %v2926_v51 = vpop.xlane.xlu1 %345  ;;  %v2928_v37 = vpop.xlane.xlu0 %342  ;;  %v636_v34 = vsel %vm304_vm1, %v522_v10, 0.0  ;;  %v639_v56 = vsel %vm304_vm1, %v523_v17, 0.0 }
  0xc8   : > { %619 = vadd.xlane.f32.xlu1 %v618_v6  ;;  %616 = vadd.xlane.f32.xlu0 %v615_v32  ;;  %v524_v6 = vsel %vm2372_vm0, 0.0, %v2557_v25  ;;  %v525_v25 = vsel %vm2372_vm0, 0.0, %v2574_v36 }
  0xc9   : > { %v2938_v57 = vpop.xlane.xlu1 %351  ;;  %v2940_v31 = vpop.xlane.xlu0 %348  ;;  %v642_v22 = vsel %vm304_vm1, %v524_v6, 0.0  ;;  %v645_v62 = vsel %vm304_vm1, %v525_v25, 0.0 }
  0xcc   : > { %625 = vadd.xlane.f32.xlu1 %v624_v15  ;;  %622 = vadd.xlane.f32.xlu0 %v621_v38  ;;  %v526_v15 = vsel %vm2372_vm0, 0.0, %v2571_v35  ;;  %v527_v35 = vsel %vm2372_vm0, 0.0, %v2588_v46 }
  0xcd   : > { %v2950_v63 = vpop.xlane.xlu1 %357  ;;  %v2952_v20 = vpop.xlane.xlu0 %354  ;;  %v648_v58 = vsel %vm304_vm1, %v526_v15, 0.0  ;;  %v651_v8 = vsel %vm304_vm1, %v527_v35, 0.0 }
  0xd0   : > { %631 = vadd.xlane.f32.xlu1 %v630_v16  ;;  %628 = vadd.xlane.f32.xlu0 %v627_v44  ;;  %v528_v16 = vsel %vm2372_vm0, 0.0, %v2585_v43  ;;  %v529_v43 = vsel %vm2372_vm0, 0.0, %v2602_v54 }
  0xd1   : > { %v2962_v9 = vpop.xlane.xlu1 %363  ;;  %v2964_v26 = vpop.xlane.xlu0 %360  ;;  %v654_v10 = vsel %vm304_vm1, %v528_v16, 0.0  ;;  %v657_v17 = vsel %vm304_vm1, %v529_v43, 0.0 }
  0xd4   : > { %637 = vadd.xlane.f32.xlu1 %v636_v34  ;;  %634 = vadd.xlane.f32.xlu0 %v633_v50  ;;  %v530_v34 = vsel %vm2372_vm0, 0.0, %v2599_v53  ;;  %v531_v53 = vsel %vm2372_vm0, 0.0, %v2616_v0 }
  0xd5   : > { %v2974_v18 = vpop.xlane.xlu1 %369  ;;  %v2976_v32 = vpop.xlane.xlu0 %366  ;;  %v660_v6 = vsel %vm304_vm1, %v530_v34, 0.0  ;;  %v663_v25 = vsel %vm304_vm1, %v531_v53, 0.0 }
  0xd8   : > { %643 = vadd.xlane.f32.xlu1 %v642_v22  ;;  %640 = vadd.xlane.f32.xlu0 %v639_v56  ;;  %v532_v22 = vsel %vm2372_vm0, 0.0, %v2613_v61  ;;  %v533_v61 = vsel %vm2372_vm0, 0.0, %v2630_v13 }
  0xd9   : > { %v2986_v28 = vpop.xlane.xlu1 %375  ;;  %v2988_v38 = vpop.xlane.xlu0 %372  ;;  %v666_v15 = vsel %vm304_vm1, %v532_v22, 0.0  ;;  %v669_v35 = vsel %vm304_vm1, %v533_v61, 0.0 }
  0xdc   : > { %649 = vadd.xlane.f32.xlu1 %v648_v58  ;;  %646 = vadd.xlane.f32.xlu0 %v645_v62  ;;  %v534_v58 = vsel %vm2372_vm0, 0.0, %v2627_v12  ;;  %v535_v12 = vsel %vm2372_vm0, 0.0, %v2644_v29 }
  0xdd   : > { %v2998_v36 = vpop.xlane.xlu1 %381  ;;  %v3000_v44 = vpop.xlane.xlu0 %378  ;;  %v672_v16 = vsel %vm304_vm1, %v534_v58, 0.0  ;;  %v675_v43 = vsel %vm304_vm1, %v535_v12, 0.0 }
  0xe0   : > { %655 = vadd.xlane.f32.xlu1 %v654_v10  ;;  %652 = vadd.xlane.f32.xlu0 %v651_v8  ;;  %v536_v10 = vsel %vm2372_vm0, 0.0, %v2641_v24  ;;  %v537_v24 = vsel %vm2372_vm0, 0.0, %v2658_v41 }
  0xe1   : > { %v3010_v46 = vpop.xlane.xlu1 %387  ;;  %v3012_v50 = vpop.xlane.xlu0 %384  ;;  %v678_v34 = vsel %vm304_vm1, %v536_v10, 0.0  ;;  %v681_v53 = vsel %vm304_vm1, %v537_v24, 0.0 }
  0xe4   : > { %661 = vadd.xlane.f32.xlu1 %v660_v6  ;;  %658 = vadd.xlane.f32.xlu0 %v657_v17  ;;  %v538_v6 = vsel %vm2372_vm0, 0.0, %v2655_v40  ;;  %v539_v40 = vsel %vm2372_vm0, 0.0, %v2672_v55 }
  0xe5   : > { %v3022_v54 = vpop.xlane.xlu1 %393  ;;  %v3024_v56 = vpop.xlane.xlu0 %390  ;;  %v684_v22 = vsel %vm304_vm1, %v538_v6, 0.0  ;;  %v687_v61 = vsel %vm304_vm1, %v539_v40, 0.0 }
  0xe8   : > { %667 = vadd.xlane.f32.xlu1 %v666_v15  ;;  %664 = vadd.xlane.f32.xlu0 %v663_v25  ;;  %v540_v15 = vsel %vm2372_vm0, 0.0, %v2669_v52  ;;  %v541_v52 = vsel %vm2372_vm0, 0.0, %v2686_v7 }
  0xe9   : > { %v3034_v0 = vpop.xlane.xlu1 %399  ;;  %v3036_v62 = vpop.xlane.xlu0 %396  ;;  %v690_v58 = vsel %vm304_vm1, %v540_v15, 0.0  ;;  %v693_v12 = vsel %vm304_vm1, %v541_v52, 0.0 }
  0xec   : > { %673 = vadd.xlane.f32.xlu1 %v672_v16  ;;  %670 = vadd.xlane.f32.xlu0 %v669_v35  ;;  %v542_v16 = vsel %vm2372_vm0, 0.0, %v2683_v2  ;;  %v543_v2 = vsel %vm2372_vm0, 0.0, %v2700_v30 }
  0xed   : > { %v3046_v13 = vpop.xlane.xlu1 %405  ;;  %v3048_v8 = vpop.xlane.xlu0 %402  ;;  %v696_v10 = vsel %vm304_vm1, %v542_v16, 0.0  ;;  %v699_v24 = vsel %vm304_vm1, %v543_v2, 0.0 }
  0xf0   : > { %679 = vadd.xlane.f32.xlu1 %v678_v34  ;;  %676 = vadd.xlane.f32.xlu0 %v675_v43  ;;  %v544_v34 = vsel %vm2372_vm0, 0.0, %v2697_v23  ;;  %v545_v23 = vsel %vm2372_vm0, 0.0, %v2714_v48 }
  0xf1   : > { %v3058_v29 = vpop.xlane.xlu1 %411  ;;  %v3060_v17 = vpop.xlane.xlu0 %408  ;;  %v702_v6 = vsel %vm304_vm1, %v544_v34, 0.0  ;;  %v705_v40 = vsel %vm304_vm1, %v545_v23, 0.0  ;;  %v4515_v34 = vld [vmem:[#allocation7_spill] sm:$0xff] }
  0xf2   : > { %v549_v2 = vsel %vm2372_vm0, 0.0, %v4515_v34  ;;  %v4522_v34 = vld [vmem:[#allocation12_spill] sm:$0xff] }
  0xf3   : > { %v717_v23 = vsel %vm304_vm1, %v549_v2, 0.0  ;;  %v4523_v2 = vld [vmem:[#allocation13_spill] sm:$0xff] }
  0xf4   : > { %685 = vadd.xlane.f32.xlu1 %v684_v22  ;;  %682 = vadd.xlane.f32.xlu0 %v681_v53  ;;  %v546_v22 = vsel %vm2372_vm0, 0.0, %v2711_v47 }
  0xf5   : > { %v3070_v41 = vpop.xlane.xlu1 %417  ;;  %v3072_v25 = vpop.xlane.xlu0 %414  ;;  %v708_v15 = vsel %vm304_vm1, %v546_v22, 0.0 }
  0xf8   : > { %691 = vadd.xlane.f32.xlu1 %v690_v58  ;;  %688 = vadd.xlane.f32.xlu0 %v687_v61  ;;  %v548_v58 = vsel %vm2372_vm0, 0.0, %v2725_v1  ;;  %v4511_v61 = vld [vmem:[#allocation5_spill] sm:$0xff] }
  0xf9   : > { %v3082_v55 = vpop.xlane.xlu1 %423  ;;  %v3084_v35 = vpop.xlane.xlu0 %420  ;;  %v547_v47 = vsel %vm2372_vm0, 0.0, %v4511_v61  ;;  %v714_v52 = vsel %vm304_vm1, %v548_v58, 0.0  ;;  %v4519_v58 = vld [vmem:[#allocation9_spill] sm:$0xff] }
  0xfa   : > { %v551_v61 = vsel %vm2372_vm0, 0.0, %v4519_v58 }
  0xfc   : > { %697 = vadd.xlane.f32.xlu1 %v696_v10  ;;  %694 = vadd.xlane.f32.xlu0 %v693_v12  ;;  %v711_v10 = vsel %vm304_vm1, %v547_v47, 0.0  ;;  %v4514_v12 = vld [vmem:[#allocation6_spill] sm:$0xff] }
  0xfd   : > { %v3094_v7 = vpop.xlane.xlu1 %429  ;;  %v3096_v43 = vpop.xlane.xlu0 %426  ;;  %v550_v1 = vsel %vm2372_vm0, 0.0, %v4514_v12  ;;  %v4520_v47 = vld [vmem:[#allocation10_spill] sm:$0xff] }
  0xfe   : > { %v720_v22 = vsel %vm304_vm1, %v550_v1, 0.0  ;;  %v556_v1 = vsel %vm2372_vm0, 0.0, %v4522_v34  ;;  %v560_v34 = vsel %vm2372_vm0, 0.0, %v2809_v11 }
  0xff   : > { %v738_v3 = vsel %vm304_vm1, %v556_v1, 0.0 }
 0x100   : > { %703 = vadd.xlane.f32.xlu1 %v702_v6  ;;  %700 = vadd.xlane.f32.xlu0 %v699_v24 }
 0x101   : > { %v3106_v30 = vpop.xlane.xlu1 %435  ;;  %v3108_v53 = vpop.xlane.xlu0 %432 }
 0x102   : > { %4510 = vst [vmem:[#allocation16_spill] sm:$0xff] %v3108_v53 }
 0x104   : > { %709 = vadd.xlane.f32.xlu1 %v708_v15  ;;  %706 = vadd.xlane.f32.xlu0 %v705_v40  ;;  %v4518_v15 = vld [vmem:[#allocation8_spill] sm:$0xff] }
 0x105   : > { %v3118_v48 = vpop.xlane.xlu1 %441  ;;  %v3120_v16 = vpop.xlane.xlu0 %438  ;;  %v552_v40 = vsel %vm2372_vm0, 0.0, %v4518_v15  ;;  %v555_v15 = vsel %vm2372_vm0, 0.0, %v4523_v2 }
 0x106   : > { %4512 = vst [vmem:[#allocation5_spill] sm:$0xff] %v3118_v48  ;;  %4513 = vst [vmem:[#allocation17_spill] sm:$0xff] %v3120_v16  ;;  %v3170_v16 = vstv %s2006_s24  ;;  %v726_v48 = vsel %vm304_vm1, %v552_v40, 0.0 }
 0x107   : > { %v3212_v1 = vmul.f32 %v3170_v16, %v2854_v14 }
 0x108   : > { %715 = vadd.xlane.f32.xlu1 %v714_v52  ;;  %712 = vadd.xlane.f32.xlu0 %v711_v10  ;;  %v554_v52 = vsel %vm2372_vm0, 0.0, %v4520_v47  ;;  %v4521_v10 = vld [vmem:[#allocation11_spill] sm:$0xff] }
 0x109   : > { %v3136_v6 = vpop.xlane.xlu1 %447  ;;  %v3138_v24 = vpop.xlane.xlu0 %444  ;;  %v553_v12 = vsel %vm2372_vm0, 0.0, %v4521_v10  ;;  %v3168_v10 = vstv %s753_s23  ;;  %4528 = vst [vmem:[#allocation10_spill] sm:$0xff] %v3212_v1 }
 0x10a   : > { %4516 = vst [vmem:[#allocation6_spill] sm:$0xff] %v3136_v6  ;;  %4517 = vst [vmem:[#allocation7_spill] sm:$0xff] %v3138_v24  ;;  %v4524_v24 = vld [vmem:[#allocation14_spill] sm:$0xff]  ;;  %v4525_v6 = vld [vmem:[#allocation15_spill] sm:$0xff]  ;;  %v729_v11 = vsel %vm304_vm1, %v553_v12, 0.0  ;;  %v3199_v40 = vmul.f32 %v3168_v10, %v2854_v14  ;;  %v3208_v12 = vstv %s3132_s26  ;;  %v3231_v14 = vmul.f32 %v3170_v16, %v2866_v21 }
 0x10b   : > { %v558_v58 = vsel %vm2372_vm0, 0.0, %v4524_v24  ;;  %v557_v47 = vsel %vm2372_vm0, 0.0, %v4525_v6  ;;  %v559_v24 = vsel %vm2372_vm0, 0.0, %v2812_v60  ;;  %v735_v60 = vsel %vm304_vm1, %v555_v15, 0.0 }
 0x10c   : > { %721 = vadd.xlane.f32.xlu1 %v720_v22  ;;  %718 = vadd.xlane.f32.xlu0 %v717_v23  ;;  %v723_v22 = vsel %vm304_vm1, %v551_v61, 0.0  ;;  %v732_v23 = vsel %vm304_vm1, %v554_v52, 0.0  ;;  %v3192_v53 = vsel %vm304_vm1, %v558_v58, 0.0  ;;  %4527 = vst [vmem:[#allocation9_spill] sm:$0xff] %v3199_v40  ;;  %v3202_v61 = vsel %vm304_vm1, %v560_v34, 0.0  ;;  %4530 = vst [vmem:[#allocation12_spill] sm:$0xff] %v3231_v14 }
 0x10d   : > { %v3180_v6 = vpop.xlane.xlu1 %453  ;;  %v3182_v2 = vpop.xlane.xlu0 %450  ;;  %v3205_v52 = vsel %vm304_vm1, %v559_v24, 0.0  ;;  %v3216_v15 = vmul.f32 %v3168_v10, %v2856_v42  ;;  %v3220_v58 = vmul.f32 %v3170_v16, %v2856_v42  ;;  %v3227_v34 = vmul.f32 %v3168_v10, %v2866_v21 }
 0x10e   : > { %4526 = vst [vmem:[#allocation8_spill] sm:$0xff] %v3180_v6  ;;  %v3195_v6 = vsel %vm304_vm1, %v557_v47, 0.0  ;;  %v3223_v47 = vstv %s3134_s27  ;;  %v3235_v24 = vmul.f32 %v3168_v10, %v2868_v59  ;;  %v3249_v21 = vmul.f32 %v3168_v10, %v2878_v27 }
 0x10f   : > { %4529 = vst [vmem:[#allocation11_spill] sm:$0xff] %v3227_v34  ;;  %v3253_v40 = vmul.f32 %v3170_v16, %v2878_v27  ;;  %v3257_v14 = vmul.f32 %v3168_v10, %v2880_v5  ;;  %v3261_v34 = vmul.f32 %v3170_v16, %v2880_v5  ;;  %v3273_v27 = vmul.f32 %v3168_v10, %v2892_v4 }
 0x110   : > { %727 = vadd.xlane.f32.xlu1 %v726_v48  ;;  %724 = vadd.xlane.f32.xlu0 %v723_v22  ;;  %v3241_v48 = vstv %s956_s30  ;;  %v3245_v22 = vmul.f32 %v3170_v16, %v2868_v59  ;;  %v3265_v59 = vmul.f32 %v3168_v10, %v2890_v33  ;;  %v3281_v5 = vmul.f32 %v3168_v10, %v2902_v39 }
 0x111   : > { %v3237_v1 = vpop.xlane.xlu1 %459  ;;  %v3239_v42 = vpop.xlane.xlu0 %456  ;;  %4531 = vst [vmem:[#allocation13_spill] sm:$0xff] %v3241_v48  ;;  %4532 = vst [vmem:[#allocation14_spill] sm:$0xff] %v3253_v40  ;;  %v3269_v48 = vmul.f32 %v3170_v16, %v2890_v33  ;;  %v3277_v40 = vmul.f32 %v3170_v16, %v2892_v4  ;;  %v3291_v33 = vstv %s3178_s29  ;;  %v3299_v4 = vmul.f32 %v3170_v16, %v2904_v49 }
 0x112   : > { %4533 = vst [vmem:[#allocation15_spill] sm:$0xff] %v3261_v34  ;;  %4534 = vst [vmem:[#allocation18_spill] sm:$0xff] %v3273_v27  ;;  %v3285_v34 = vmul.f32 %v3170_v16, %v2902_v39  ;;  %v3295_v27 = vmul.f32 %v3168_v10, %v2904_v49  ;;  %v3307_v39 = vmul.f32 %v3170_v16, %v2914_v45 }
 0x113   : > { %4535 = vst [vmem:[#allocation19_spill] sm:$0xff] %v3281_v5  ;;  %4536 = vst [vmem:[#allocation20_spill] sm:$0xff] %v3291_v33  ;;  %v3303_v5 = vmul.f32 %v3168_v10, %v2914_v45  ;;  %v3315_v33 = vmul.f32 %v3168_v10, %v2916_v19  ;;  %v3319_v49 = vmul.f32 %v3170_v16, %v2916_v19 }
 0x114   : > { %733 = vadd.xlane.f32.xlu1 %v732_v23  ;;  %730 = vadd.xlane.f32.xlu0 %v729_v11  ;;  %4537 = vst [vmem:[#allocation21_spill] sm:$0xff] %v3299_v4  ;;  %4539 = vst [vmem:[#allocation23_spill] sm:$0xff] %v3307_v39  ;;  %v3323_v4 = vmul.f32 %v3168_v10, %v2926_v51  ;;  %v3327_v45 = vmul.f32 %v3170_v16, %v2926_v51 }
 0x115   : > { %4538 = vst [vmem:[#allocation22_spill] sm:$0xff] %v3303_v5  ;;  %v3309_v23 = vpop.xlane.xlu1 %465  ;;  %v3311_v11 = vpop.xlane.xlu0 %462  ;;  %4540 = vst [vmem:[#allocation24_spill] sm:$0xff] %v3319_v49  ;;  %v3331_v39 = vmul.f32 %v3168_v10, %v2928_v37  ;;  %v3335_v5 = vmul.f32 %v3170_v16, %v2928_v37  ;;  %v3339_v19 = vmul.f32 %v3168_v10, %v2938_v57 }
 0x116   : > { %4541 = vst [vmem:[#allocation25_spill] sm:$0xff] %v3327_v45  ;;  %v3343_v49 = vmul.f32 %v3170_v16, %v2938_v57  ;;  %v3347_v51 = vmul.f32 %v3168_v10, %v2940_v31  ;;  %v3351_v45 = vmul.f32 %v3170_v16, %v2940_v31  ;;  %v3355_v37 = vmul.f32 %v3168_v10, %v2950_v63 }
 0x117   : > { %4542 = vst [vmem:[#allocation26_spill] sm:$0xff] %v3339_v19  ;;  %v3359_v19 = vstv %s1216_s4  ;;  %v3363_v57 = vmul.f32 %v3170_v16, %v2950_v63  ;;  %v3371_v31 = vmul.f32 %v3170_v16, %v2952_v20  ;;  %v3383_v63 = vmul.f32 %v3170_v16, %v2962_v9 }
 0x118   : > { %4543 = vst [vmem:[#allocation27_spill] sm:$0xff] %v3347_v51  ;;  %4544 = vst [vmem:[#allocation28_spill] sm:$0xff] %v3355_v37  ;;  %739 = vadd.xlane.f32.xlu1 %v738_v3  ;;  %736 = vadd.xlane.f32.xlu0 %v735_v60  ;;  %v3367_v51 = vmul.f32 %v3168_v10, %v2952_v20  ;;  %v3375_v3 = vmul.f32 %v3168_v10, %v2962_v9 }
 0x119   : > { %4546 = vst [vmem:[#allocation30_spill] sm:$0xff] %v3371_v31  ;;  %v3377_v60 = vpop.xlane.xlu1 %471  ;;  %v3379_v37 = vpop.xlane.xlu0 %468  ;;  %4548 = vst [vmem:[#allocation32_spill] sm:$0xff] %v3383_v63  ;;  %v3391_v20 = vmul.f32 %v3170_v16, %v2964_v26  ;;  %v3399_v31 = vmul.f32 %v3170_v16, %v2974_v18  ;;  %v3403_v9 = vmul.f32 %v3168_v10, %v2976_v32 }
 0x11a   : > { %4545 = vst [vmem:[#allocation29_spill] sm:$0xff] %v3367_v51  ;;  %4547 = vst [vmem:[#allocation31_spill] sm:$0xff] %v3375_v3  ;;  %v3387_v51 = vmul.f32 %v3168_v10, %v2964_v26  ;;  %v3395_v3 = vmul.f32 %v3168_v10, %v2974_v18  ;;  %v3407_v63 = vmul.f32 %v3170_v16, %v2976_v32  ;;  %v3428_v32 = vstv %s3287_s3 }
 0x11b   : > { %4549 = vst [vmem:[#allocation33_spill] sm:$0xff] %v3391_v20  ;;  %4550 = vst [vmem:[#allocation34_spill] sm:$0xff] %v3399_v31  ;;  %v3411_v26 = vmul.f32 %v3168_v10, %v2986_v28  ;;  %v3415_v20 = vmul.f32 %v3170_v16, %v2986_v28  ;;  %v3419_v18 = vmul.f32 %v3168_v10, %v2988_v38 }
 0x11c   : > { %v3423_v31 = vmul.f32 %v3170_v16, %v2988_v38  ;;  %745 = vadd.xlane.f32.xlu1 %v3192_v53  ;;  %742 = vadd.xlane.f32.xlu0 %v3195_v6  ;;  %v3436_v28 = vmul.f32 %v3170_v16, %v2998_v36  ;;  %v3444_v38 = vmul.f32 %v3170_v16, %v3000_v44 }
 0x11d   : > { %4551 = vst [vmem:[#allocation35_spill] sm:$0xff] %v3411_v26  ;;  %4552 = vst [vmem:[#allocation36_spill] sm:$0xff] %v3419_v18  ;;  %v3432_v26 = vmul.f32 %v3168_v10, %v2998_v36  ;;  %v3440_v18 = vmul.f32 %v3168_v10, %v3000_v44  ;;  %v3446_v53 = vpop.xlane.xlu1 %477  ;;  %v3448_v6 = vpop.xlane.xlu0 %474  ;;  %v3456_v36 = vmul.f32 %v3170_v16, %v3010_v46 }
 0x11e   : > { %4554 = vst [vmem:[#allocation38_spill] sm:$0xff] %v3436_v28  ;;  %4556 = vst [vmem:[#allocation40_spill] sm:$0xff] %v3444_v38  ;;  %v3464_v44 = vmul.f32 %v3170_v16, %v3012_v50  ;;  %v3468_v38 = vmul.f32 %v3168_v10, %v3022_v54  ;;  %v3472_v28 = vmul.f32 %v3170_v16, %v3022_v54 }
 0x11f   : > { %4553 = vst [vmem:[#allocation37_spill] sm:$0xff] %v3432_v26  ;;  %4555 = vst [vmem:[#allocation39_spill] sm:$0xff] %v3440_v18  ;;  %v3452_v26 = vmul.f32 %v3168_v10, %v3010_v46  ;;  %v3460_v18 = vmul.f32 %v3168_v10, %v3012_v50  ;;  %v3476_v46 = vmul.f32 %v3168_v10, %v3024_v56 }
 0x120   : > { %4557 = vst [vmem:[#allocation41_spill] sm:$0xff] %v3456_v36  ;;  %4558 = vst [vmem:[#allocation42_spill] sm:$0xff] %v3464_v44  ;;  %v3480_v36 = vmul.f32 %v3170_v16, %v3024_v56  ;;  %v3484_v50 = vmul.f32 %v3168_v10, %v3034_v0  ;;  %v3488_v44 = vmul.f32 %v3170_v16, %v3034_v0  ;;  %751 = vadd.xlane.f32.xlu1 %v3202_v61 }
 0x121   : > { %4559 = vst [vmem:[#allocation43_spill] sm:$0xff] %v3476_v46  ;;  %v3492_v54 = vmul.f32 %v3168_v10, %v3036_v62  ;;  %748 = vadd.xlane.f32.xlu0 %v3205_v52  ;;  %v3497_v46 = vstv %s3357_s5  ;;  %v3501_v56 = vmul.f32 %v3170_v16, %v3036_v62  ;;  %v3509_v0 = vmul.f32 %v3170_v16, %v3046_v13  ;;  %v484_v61 = vpop.xlane.xlu1 %483  ;;  %v3515_v52 = vpop.xlane.xlu0 %480 }
 0x122   : > { %4560 = vst [vmem:[#allocation44_spill] sm:$0xff] %v3484_v50  ;;  %4561 = vst [vmem:[#allocation45_spill] sm:$0xff] %v3488_v44  ;;  %v3505_v50 = vmul.f32 %v3168_v10, %v3046_v13  ;;  %v3519_v44 = vmul.f32 %v3170_v16, %v3048_v8  ;;  %v3523_v62 = vmul.f32 %v3168_v10, %v3058_v29 }
 0x123   : > { %4562 = vst [vmem:[#allocation46_spill] sm:$0xff] %v3492_v54  ;;  %v3513_v54 = vmul.f32 %v3168_v10, %v3048_v8  ;;  %v3531_v13 = vmul.f32 %v3168_v10, %v3060_v17  ;;  %v3539_v8 = vmul.f32 %v3168_v10, %v3070_v41 }
 0x124   : > { %4563 = vst [vmem:[#allocation47_spill] sm:$0xff] %v3505_v50  ;;  %4565 = vst [vmem:[#allocation49_spill] sm:$0xff] %v3519_v44  ;;  %v3527_v50 = vmul.f32 %v3170_v16, %v3058_v29  ;;  %v3543_v44 = vmul.f32 %v3170_v16, %v3070_v41  ;;  %v3547_v29 = vmul.f32 %v3168_v10, %v3072_v25 }
 0x125   : > { %4564 = vst [vmem:[#allocation48_spill] sm:$0xff] %v3513_v54  ;;  %v3535_v54 = vmul.f32 %v3170_v16, %v3060_v17  ;;  %v3555_v17 = vmul.f32 %v3168_v10, %v3082_v55  ;;  %v3563_v41 = vmul.f32 %v3168_v10, %v3084_v35 }
 0x126   : > { %4566 = vst [vmem:[#allocation50_spill] sm:$0xff] %v3527_v50  ;;  %4568 = vst [vmem:[#allocation52_spill] sm:$0xff] %v3543_v44  ;;  %v3551_v50 = vmul.f32 %v3170_v16, %v3072_v25  ;;  %v3567_v44 = vmul.f32 %v3170_v16, %v3084_v35  ;;  %v3571_v25 = vmul.f32 %v3168_v10, %v3094_v7 }
 0x127   : > { %4567 = vst [vmem:[#allocation51_spill] sm:$0xff] %v3535_v54  ;;  %4570 = vst [vmem:[#allocation54_spill] sm:$0xff] %v3555_v17  ;;  %v3559_v54 = vmul.f32 %v3170_v16, %v3082_v55  ;;  %v3579_v55 = vmul.f32 %v3168_v10, %v3096_v43  ;;  %v3581_v17 = vpop.xlane.xlu0 %486  ;;  %v3589_v35 = vmul.f32 %v3168_v10, %v3106_v30 }
 0x128   : > { %4569 = vst [vmem:[#allocation53_spill] sm:$0xff] %v3551_v50  ;;  %4572 = vst [vmem:[#allocation56_spill] sm:$0xff] %v3563_v41  ;;  %v3575_v50 = vmul.f32 %v3170_v16, %v3094_v7  ;;  %v3585_v41 = vmul.f32 %v3170_v16, %v3096_v43  ;;  %v4580_v7 = vld [vmem:[#allocation16_spill] sm:$0xff] }
 0x129   : > { %4571 = vst [vmem:[#allocation55_spill] sm:$0xff] %v3559_v54  ;;  %4573 = vst [vmem:[#allocation57_spill] sm:$0xff] %v3567_v44  ;;  %v490_v54 = vpop.xlane.xlu1 %489  ;;  %v4583_v44 = vld [vmem:[#allocation5_spill] sm:$0xff] }
 0x12a   : > { %4574 = vst [vmem:[#allocation58_spill] sm:$0xff] %v3571_v25  ;;  %4575 = vst [vmem:[#allocation59_spill] sm:$0xff] %v3575_v50  ;;  %v3593_v25 = vmul.f32 %v3170_v16, %v3106_v30  ;;  %v3597_v50 = vmul.f32 %v3168_v10, %v4580_v7  ;;  %v3605_v43 = vmul.f32 %v3168_v10, %v4583_v44 }
 0x12b   : > { %4576 = vst [vmem:[#allocation60_spill] sm:$0xff] %v3579_v55  ;;  %4577 = vst [vmem:[#allocation61_spill] sm:$0xff] %v3585_v41  ;;  %v3601_v55 = vmul.f32 %v3170_v16, %v4580_v7  ;;  %v3609_v41 = vmul.f32 %v3170_v16, %v4583_v44 }
 0x12c   : > { %4578 = vst [vmem:[#allocation62_spill] sm:$0xff] %v3589_v35  ;;  %4579 = vst [vmem:[#allocation63_spill] sm:$0xff] %v3593_v25  ;;  %v4586_v35 = vld [vmem:[#allocation17_spill] sm:$0xff] }
 0x12d   : > { %4581 = vst [vmem:[#allocation16_spill] sm:$0xff] %v3597_v50  ;;  %4582 = vst [vmem:[#allocation64_spill] sm:$0xff] %v3601_v55  ;;  %v3613_v30 = vmul.f32 %v3168_v10, %v4586_v35  ;;  %v3617_v25 = vmul.f32 %v3170_v16, %v4586_v35  ;;  %v4589_v50 = vld [vmem:[#allocation6_spill] sm:$0xff] }
 0x12e   : > { %4584 = vst [vmem:[#allocation5_spill] sm:$0xff] %v3605_v43  ;;  %4585 = vst [vmem:[#allocation65_spill] sm:$0xff] %v3609_v41  ;;  %v3621_v7 = vmul.f32 %v3168_v10, %v4589_v50  ;;  %v3625_v55 = vmul.f32 %v3170_v16, %v4589_v50  ;;  %v4592_v43 = vld [vmem:[#allocation7_spill] sm:$0xff]  ;;  %v3645_v50 = vmul.f32 %v3168_v10, %v3182_v2 }
 0x12f   : > { %4587 = vst [vmem:[#allocation17_spill] sm:$0xff] %v3613_v30  ;;  %4588 = vst [vmem:[#allocation66_spill] sm:$0xff] %v3617_v25  ;;  %v3629_v44 = vmul.f32 %v3168_v10, %v4592_v43  ;;  %v3633_v41 = vmul.f32 %v3170_v16, %v4592_v43  ;;  %v4594_v30 = vld [vmem:[#allocation8_spill] sm:$0xff]  ;;  %v3655_v43 = vmul.f32 %v3168_v10, %v3237_v1 }
 0x130   : > { %4590 = vst [vmem:[#allocation6_spill] sm:$0xff] %v3621_v7  ;;  %4591 = vst [vmem:[#allocation67_spill] sm:$0xff] %v3625_v55  ;;  %v3637_v35 = vmul.f32 %v3168_v10, %v4594_v30  ;;  %v3641_v25 = vmul.f32 %v3170_v16, %v4594_v30  ;;  %v496_v55 = vpop.xlane.xlu1 %495  ;;  %v3647_v7 = vpop.xlane.xlu0 %492  ;;  %v3663_v30 = vmul.f32 %v3168_v10, %v3239_v42 }
 0x131   : > { %4593 = vst [vmem:[#allocation7_spill] sm:$0xff] %v3629_v44  ;;  %4596 = vst [vmem:[#allocation68_spill] sm:$0xff] %v3645_v50  ;;  %v3651_v44 = vmul.f32 %v3170_v16, %v3182_v2  ;;  %v3667_v50 = vmul.f32 %v3170_v16, %v3239_v42  ;;  %v3671_v2 = vmul.f32 %v3168_v10, %v3309_v23 }
 0x132   : > { %4595 = vst [vmem:[#allocation8_spill] sm:$0xff] %v3637_v35  ;;  %4598 = vst [vmem:[#allocation70_spill] sm:$0xff] %v3655_v43  ;;  %v3659_v35 = vmul.f32 %v3170_v16, %v3237_v1  ;;  %v3679_v1 = vmul.f32 %v3168_v10, %v3311_v11  ;;  %v3687_v42 = vmul.f32 %v3168_v10, %v3377_v60  ;;  %v4627_v43 = vld [vmem:[#allocation10_spill] sm:$0xff] }
 0x133   : > { %4597 = vst [vmem:[#allocation69_spill] sm:$0xff] %v3651_v44  ;;  %4600 = vst [vmem:[#allocation72_spill] sm:$0xff] %v3663_v30  ;;  %v3675_v44 = vmul.f32 %v3170_v16, %v3309_v23  ;;  %v3695_v23 = vmul.f32 %v3168_v10, %v3379_v37 }
 0x134   : > { %4599 = vst [vmem:[#allocation71_spill] sm:$0xff] %v3659_v35  ;;  %4601 = vst [vmem:[#allocation73_spill] sm:$0xff] %v3667_v50  ;;  %v3683_v35 = vmul.f32 %v3170_v16, %v3311_v11  ;;  %v3691_v50 = vmul.f32 %v3170_v16, %v3377_v60  ;;  %v3703_v11 = vmul.f32 %v3168_v10, %v3446_v53 }
 0x135   : > { %4602 = vst [vmem:[#allocation74_spill] sm:$0xff] %v3671_v2  ;;  %4603 = vst [vmem:[#allocation75_spill] sm:$0xff] %v3675_v44  ;;  %v3699_v44 = vmul.f32 %v3170_v16, %v3379_v37  ;;  %v3711_v60 = vmul.f32 %v3168_v10, %v3448_v6 }
 0x136   : > { %4604 = vst [vmem:[#allocation76_spill] sm:$0xff] %v3679_v1  ;;  %4605 = vst [vmem:[#allocation77_spill] sm:$0xff] %v3683_v35  ;;  %v3707_v35 = vmul.f32 %v3170_v16, %v3446_v53  ;;  %v3722_v53 = vmul.f32 %v3168_v10, %v484_v61 }
 0x137   : > { %4606 = vst [vmem:[#allocation78_spill] sm:$0xff] %v3687_v42  ;;  %4607 = vst [vmem:[#allocation79_spill] sm:$0xff] %v3691_v50  ;;  %v566_v50 = vpop.xlane.xlu1 %565  ;;  %v563_v42 = vpop.xlane.xlu0 %562 }
 0x138   : > { %4608 = vst [vmem:[#allocation80_spill] sm:$0xff] %v3695_v23  ;;  %4609 = vst [vmem:[#allocation81_spill] sm:$0xff] %v3699_v44  ;;  %v829_v23 = vmul.f32 %v3208_v12, %v566_v50  ;;  %v1089_v1 = vmul.f32 %v3223_v47, %v566_v50  ;;  %v828_v37 = vmul.f32 %v3208_v12, %v563_v42 }
 0x139   : > { %4610 = vst [vmem:[#allocation82_spill] sm:$0xff] %v3703_v11  ;;  %4611 = vst [vmem:[#allocation83_spill] sm:$0xff] %v3707_v35  ;;  %v1088_v44 = vmul.f32 %v3223_v47, %v563_v42  ;;  %v3719_v11 = vmul.f32 %v3170_v16, %v3448_v6  ;;  %v3725_v35 = vmul.f32 %v3170_v16, %v484_v61 }
 0x13a   : > { %4612 = vst [vmem:[#allocation84_spill] sm:$0xff] %v3711_v60  ;;  %4614 = vst [vmem:[#allocation86_spill] sm:$0xff] %v3722_v53  ;;  %v3729_v60 = vmul.f32 %v3168_v10, %v3515_v52  ;;  %v893_v50 = vadd.f32 %v829_v23, %v3235_v24  ;;  %v1153_v2 = vadd.f32 %v1089_v1, %v3245_v22  ;;  %v4621_v1 = vld [vmem:[#allocation13_spill] sm:$0xff] }
 0x13b   : > { %4613 = vst [vmem:[#allocation85_spill] sm:$0xff] %v3719_v11  ;;  %4615 = vst [vmem:[#allocation87_spill] sm:$0xff] %v3725_v35  ;;  %v892_v42 = vadd.f32 %v828_v37, %v3216_v15  ;;  %v1152_v30 = vadd.f32 %v1088_v44, %v3220_v58  ;;  %v3737_v6 = vmul.f32 %v3170_v16, %v3515_v52  ;;  %v572_v24 = vpop.xlane.xlu1 %571  ;;  %v569_v22 = vpop.xlane.xlu0 %568 }
 0x13c   : > { %4616 = vst [vmem:[#allocation88_spill] sm:$0xff] %v3729_v60  ;;  %v3740_v53 = vmul.f32 %v3168_v10, %v490_v54  ;;  %v3743_v61 = vmul.f32 %v3170_v16, %v490_v54  ;;  %v3747_v60 = vmul.f32 %v3168_v10, %v3581_v17  ;;  %v959_v15 = vadd.f32 %v4621_v1, %v893_v50 }
 0x13d   : > { %4617 = vst [vmem:[#allocation89_spill] sm:$0xff] %v3737_v6  ;;  %v1219_v58 = vadd.f32 %v3359_v19, %v1153_v2  ;;  %v958_v44 = vadd.f32 %v4621_v1, %v892_v42  ;;  %v1218_v52 = vadd.f32 %v3359_v19, %v1152_v30  ;;  %v831_v23 = vmul.f32 %v3208_v12, %v572_v24  ;;  %v4624_v30 = vld [vmem:[#allocation11_spill] sm:$0xff]  ;;  %v4626_v6 = vld [vmem:[#allocation9_spill] sm:$0xff] }
 0x13e   : > { %4618 = vst [vmem:[#allocation90_spill] sm:$0xff] %v3740_v53  ;;  %4619 = vst [vmem:[#allocation91_spill] sm:$0xff] %v3743_v61  ;;  %v1091_v37 = vmul.f32 %v3223_v47, %v572_v24  ;;  %v830_v54 = vmul.f32 %v3208_v12, %v569_v22  ;;  %v1090_v61 = vmul.f32 %v3223_v47, %v569_v22  ;;  %2034 = vtanh.f32 %v959_v15  ;;  %v4625_v53 = vld [vmem:[#allocation12_spill] sm:$0xff] }
 0x13f   : > { %4620 = vst [vmem:[#allocation92_spill] sm:$0xff] %v3747_v60  ;;  %v3759_v60 = vmul.f32 %v3170_v16, %v3581_v17  ;;  %v3762_v50 = vmul.f32 %v3168_v10, %v496_v55  ;;  %v3765_v2 = vmul.f32 %v3170_v16, %v496_v55  ;;  %2036 = vtanh.f32 %v1219_v58  ;;  %v578_v11 = vpop.xlane.xlu1 %577  ;;  %v575_v22 = vpop.xlane.xlu0 %574 }
 0x140   : > { %v895_v42 = vadd.f32 %v831_v23, %v4624_v30  ;;  %v1155_v24 = vadd.f32 %v1091_v37, %v4625_v53  ;;  %v894_v35 = vadd.f32 %v830_v54, %v4626_v6  ;;  %2038 = vtanh.f32 %v958_v44  ;;  %v4628_v23 = vld [vmem:[#allocation14_spill] sm:$0xff] }
 0x141   : > { %4622 = vst [vmem:[#allocation13_spill] sm:$0xff] %v3759_v60  ;;  %4623 = vst [vmem:[#allocation93_spill] sm:$0xff] %v3762_v50  ;;  %v1154_v17 = vadd.f32 %v1090_v61, %v4627_v43  ;;  %v833_v60 = vmul.f32 %v3208_v12, %v578_v11  ;;  %v1093_v50 = vmul.f32 %v3223_v47, %v578_v11  ;;  %2040 = vtanh.f32 %v1218_v52 }
 0x142   : > { %v961_v55 = vadd.f32 %v4621_v1, %v895_v42  ;;  %v1221_v15 = vadd.f32 %v3359_v19, %v1155_v24  ;;  %v960_v58 = vadd.f32 %v4621_v1, %v894_v35  ;;  %v832_v44 = vmul.f32 %v3208_v12, %v575_v22 }
 0x143   : > { %v1220_v53 = vadd.f32 %v3359_v19, %v1154_v17  ;;  %v897_v6 = vadd.f32 %v833_v60, %v3249_v21  ;;  %v1157_v37 = vadd.f32 %v1093_v50, %v4628_v23  ;;  %v3782_v43 = vmul.f32 %v3168_v10, %v3647_v7  ;;  %v584_v35 = vpop.xlane.xlu1 %583  ;;  %v581_v52 = vpop.xlane.xlu0 %580  ;;  %v4629_v50 = vld [vmem:[#allocation15_spill] sm:$0xff] }
 0x144   : > { %v3786_v11 = vmul.f32 %v3170_v16, %v3647_v7  ;;  %2042 = vtanh.f32 %v961_v55  ;;  %v1092_v61 = vmul.f32 %v3223_v47, %v575_v22  ;;  %v896_v54 = vadd.f32 %v832_v44, %v3257_v14 }
 0x145   : > { %2044 = vtanh.f32 %v1221_v15  ;;  %v963_v21 = vadd.f32 %v4621_v1, %v897_v6  ;;  %v1223_v60 = vadd.f32 %v3359_v19, %v1157_v37  ;;  %v835_v30 = vmul.f32 %v3208_v12, %v584_v35  ;;  %v4630_v15 = vld [vmem:[#allocation18_spill] sm:$0xff] }
 0x146   : > { %2046 = vtanh.f32 %v960_v58  ;;  %v1156_v10 = vadd.f32 %v1092_v61, %v4629_v50  ;;  %v1095_v16 = vmul.f32 %v3223_v47, %v584_v35  ;;  %v962_v7 = vadd.f32 %v4621_v1, %v896_v54  ;;  %v4631_v35 = vld [vmem:[#allocation19_spill] sm:$0xff] }
 0x147   : > { %2048 = vtanh.f32 %v1220_v53  ;;  %v834_v42 = vmul.f32 %v3208_v12, %v581_v52  ;;  %v1094_v24 = vmul.f32 %v3223_v47, %v581_v52  ;;  %v899_v17 = vadd.f32 %v835_v30, %v3265_v59  ;;  %v590_v55 = vpop.xlane.xlu1 %589  ;;  %v587_v23 = vpop.xlane.xlu0 %586 }
 0x148   : > { %2050 = vtanh.f32 %v963_v21  ;;  %v1222_v22 = vadd.f32 %v3359_v19, %v1156_v10  ;;  %v1159_v14 = vadd.f32 %v1095_v16, %v3269_v48  ;;  %v837_v53 = vmul.f32 %v3208_v12, %v590_v55 }
 0x149   : > { %2052 = vtanh.f32 %v1223_v60  ;;  %v898_v58 = vadd.f32 %v834_v42, %v4630_v15  ;;  %v1158_v6 = vadd.f32 %v1094_v24, %v3277_v40  ;;  %v965_v37 = vadd.f32 %v4621_v1, %v899_v17 }
 0x14a   : > { %2054 = vtanh.f32 %v962_v7  ;;  %v1225_v44 = vadd.f32 %v3359_v19, %v1159_v14  ;;  %v1097_v61 = vmul.f32 %v3223_v47, %v590_v55  ;;  %v901_v52 = vadd.f32 %v837_v53, %v4631_v35  ;;  %v4632_v14 = vld [vmem:[#allocation20_spill] sm:$0xff] }
 0x14b   : > { %2056 = vtanh.f32 %v1222_v22  ;;  %v964_v59 = vadd.f32 %v4621_v1, %v898_v58  ;;  %v1224_v48 = vadd.f32 %v3359_v19, %v1158_v6  ;;  %v2035_v21 = vpop.eup %2034  ;;  %v836_v60 = vmul.f32 %v3208_v12, %v587_v23  ;;  %v596_v50 = vpop.xlane.xlu1 %595  ;;  %v4633_v58 = vld [vmem:[#allocation21_spill] sm:$0xff] }
 0x14c   : > { %2058 = vtanh.f32 %v965_v37  ;;  %v1161_v40 = vadd.f32 %v1097_v61, %v3285_v34  ;;  %v1096_v54 = vmul.f32 %v3223_v47, %v587_v23  ;;  %v2037_v10 = vpop.eup %2036  ;;  %v1411_v30 = vmul.f32 %v2035_v21, %v2035_v21 }
 0x14d   : > { %2060 = vtanh.f32 %v1225_v44  ;;  %v967_v16 = vadd.f32 %v4621_v1, %v901_v52  ;;  %v839_v7 = vmul.f32 %v3208_v12, %v596_v50  ;;  %v2039_v42 = vpop.eup %2038  ;;  %v1540_v24 = vmul.f32 %v2037_v10, %v2037_v10 }
 0x14e   : > { %2062 = vtanh.f32 %v964_v59  ;;  %v1227_v22 = vadd.f32 %v3359_v19, %v1161_v40  ;;  %v900_v34 = vadd.f32 %v836_v60, %v3295_v27  ;;  %v2041_v17 = vpop.eup %2040  ;;  %v1476_v55 = vmul.f32 %v4632_v14, %v1411_v30  ;;  %v4634_v27 = vld [vmem:[#allocation22_spill] sm:$0xff] }
 0x14f   : > { %v1410_v15 = vmul.f32 %v2039_v42, %v2039_v42  ;;  %2064 = vtanh.f32 %v1224_v48  ;;  %v1160_v6 = vadd.f32 %v1096_v54, %v4633_v58  ;;  %v1605_v53 = vmul.f32 %v3428_v32, %v1540_v24  ;;  %v593_v58 = vpop.xlane.xlu0 %592 }
 0x150   : > { %v1539_v23 = vmul.f32 %v2041_v17, %v2041_v17  ;;  %2066 = vtanh.f32 %v967_v16  ;;  %v966_v37 = vadd.f32 %v4621_v1, %v900_v34  ;;  %v903_v35 = vadd.f32 %v839_v7, %v4634_v27 }
 0x151   : > { %v2043_v44 = vpop.eup %2042  ;;  %v1475_v61 = vmul.f32 %v4632_v14, %v1410_v15  ;;  %2068 = vtanh.f32 %v1227_v22  ;;  %v1226_v59 = vadd.f32 %v3359_v19, %v1160_v6  ;;  %v1669_v21 = vadd.f32 %v1605_v53, %v1476_v55  ;;  %v4635_v15 = vld [vmem:[#allocation23_spill] sm:$0xff] }
 0x152   : > { %v2045_v52 = vpop.eup %2044  ;;  %v1604_v48 = vmul.f32 %v3428_v32, %v1539_v23  ;;  %v1413_v40 = vmul.f32 %v2043_v44, %v2043_v44  ;;  %2070 = vtanh.f32 %v966_v37  ;;  %v969_v10 = vadd.f32 %v4621_v1, %v903_v35 }
 0x153   : > { %v2047_v60 = vpop.eup %2046  ;;  %v1542_v54 = vmul.f32 %v2045_v52, %v2045_v52  ;;  %2072 = vtanh.f32 %v1226_v59  ;;  %v1099_v30 = vmul.f32 %v3223_v47, %v596_v50  ;;  %v1734_v42 = vadd.f32 %v3497_v46, %v1669_v21 }
 0x154   : > { %v2049_v16 = vpop.eup %2048  ;;  %v1668_v24 = vadd.f32 %v1604_v48, %v1475_v61  ;;  %v1478_v7 = vmul.f32 %v4632_v14, %v1413_v40  ;;  %v1412_v22 = vmul.f32 %v2047_v60, %v2047_v60  ;;  %2074 = vtanh.f32 %v969_v10 }
 0x155   : > { %v2051_v34 = vpop.eup %2050  ;;  %v1607_v17 = vmul.f32 %v3428_v32, %v1542_v54  ;;  %v1541_v55 = vmul.f32 %v2049_v16, %v2049_v16  ;;  %v1163_v50 = vadd.f32 %v1099_v30, %v4635_v15  ;;  %v1798_v53 = vand.u32 2147483647, %v1734_v42 }
 0x156   : > { %v2053_v6 = vpop.eup %2052  ;;  %v1733_v23 = vadd.f32 %v3497_v46, %v1668_v24  ;;  %v1477_v37 = vmul.f32 %v4632_v14, %v1412_v22  ;;  %v1415_v44 = vmul.f32 %v2051_v34, %v2051_v34  ;;  %v838_v54 = vmul.f32 %v3208_v12, %v593_v58 }
 0x157   : > { %v2055_v61 = vpop.eup %2054  ;;  %v1671_v59 = vadd.f32 %v1607_v17, %v1478_v7  ;;  %v1606_v27 = vmul.f32 %v3428_v32, %v1541_v55  ;;  %v1544_v35 = vmul.f32 %v2053_v6, %v2053_v6  ;;  %v1229_v52 = vadd.f32 %v3359_v19, %v1163_v50  ;;  %1863 = vst.msk [vmem:[%s3834_s8 + $0x8] sm:$0xff] %vm1861_vm2, %v1798_v53 }
 0x158   : > { %v2057_v21 = vpop.eup %2056  ;;  %v1797_v48 = vand.u32 2147483647, %v1733_v23  ;;  %v1480_v40 = vmul.f32 %v4632_v14, %v1415_v44  ;;  %v1414_v60 = vmul.f32 %v2055_v61, %v2055_v61  ;;  %v902_v17 = vadd.f32 %v838_v54, %v3315_v33  ;;  %v602_v23 = vpop.xlane.xlu1 %601 }
 0x159   : > { %v2059_v10 = vpop.eup %2058  ;;  %v1736_v30 = vadd.f32 %v3497_v46, %v1671_v59  ;;  %v1670_v16 = vadd.f32 %v1606_v27, %v1477_v37  ;;  %v1609_v42 = vmul.f32 %v3428_v32, %v1544_v35  ;;  %v1543_v24 = vmul.f32 %v2057_v21, %v2057_v21 }
 0x15a   : > { %v2061_v7 = vpop.eup %2060  ;;  %1862 = vst.msk [vmem:[%s3834_s8] sm:$0xff] %vm1861_vm2, %v1797_v48  ;;  %v1479_v22 = vmul.f32 %v4632_v14, %v1414_v60  ;;  %v1417_v34 = vmul.f32 %v2059_v10, %v2059_v10  ;;  %2076 = vtanh.f32 %v1229_v52  ;;  %v968_v27 = vadd.f32 %v4621_v1, %v902_v17 }
 0x15b   : > { %v2063_v55 = vpop.eup %2062  ;;  %v1800_v15 = vand.u32 2147483647, %v1736_v30  ;;  %v1735_v50 = vadd.f32 %v3497_v46, %v1670_v16  ;;  %v1673_v6 = vadd.f32 %v1609_v42, %v1480_v40  ;;  %v1608_v53 = vmul.f32 %v3428_v32, %v1543_v24  ;;  %v599_v16 = vpop.xlane.xlu0 %598 }
 0x15c   : > { %v2065_v37 = vpop.eup %2064  ;;  %v1482_v44 = vmul.f32 %v4632_v14, %v1417_v34  ;;  %v1546_v61 = vmul.f32 %v2061_v7, %v2061_v7  ;;  %v1416_v59 = vmul.f32 %v2063_v55, %v2063_v55  ;;  %v1098_v30 = vmul.f32 %v3223_v47, %v593_v58 }
 0x15d   : > { %v2067_v35 = vpop.eup %2066  ;;  %1865 = vst.msk [vmem:[%s3834_s8 + $0x18] sm:$0xff] %vm1861_vm2, %v1800_v15  ;;  %v1799_v33 = vand.u32 2147483647, %v1735_v50  ;;  %v1738_v52 = vadd.f32 %v3497_v46, %v1673_v6  ;;  %v1672_v21 = vadd.f32 %v1608_v53, %v1479_v22  ;;  %v1545_v48 = vmul.f32 %v2065_v37, %v2065_v37  ;;  %v4636_v6 = vld [vmem:[#allocation24_spill] sm:$0xff] }
 0x15e   : > { %v2069_v40 = vpop.eup %2068  ;;  %v1611_v60 = vmul.f32 %v3428_v32, %v1546_v61  ;;  %v1481_v54 = vmul.f32 %v4632_v14, %v1416_v59  ;;  %v1419_v10 = vmul.f32 %v2067_v35, %v2067_v35  ;;  %v1162_v53 = vadd.f32 %v1098_v30, %v4636_v6  ;;  %v608_v35 = vpop.xlane.xlu1 %607 }
 0x15f   : > { %v2071_v42 = vpop.eup %2070  ;;  %1864 = vst.msk [vmem:[%s3834_s8 + $0x10] sm:$0xff] %vm1861_vm2, %v1799_v33  ;;  %v1802_v24 = vand.u32 2147483647, %v1738_v52  ;;  %v1737_v7 = vadd.f32 %v3497_v46, %v1672_v21  ;;  %v1610_v34 = vmul.f32 %v3428_v32, %v1545_v48  ;;  %v1548_v22 = vmul.f32 %v2069_v40, %v2069_v40 }
 0x160   : > { %v2073_v17 = vpop.eup %2072  ;;  %v1675_v55 = vadd.f32 %v1611_v60, %v1482_v44  ;;  %v1484_v15 = vmul.f32 %v4632_v14, %v1419_v10  ;;  %v1418_v50 = vmul.f32 %v2071_v42, %v2071_v42  ;;  %v1228_v44 = vadd.f32 %v3359_v19, %v1162_v53 }
 0x161   : > { %1867 = vst.msk [vmem:[%s3834_s8 + $0x28] sm:$0xff] %vm1861_vm2, %v1802_v24  ;;  %v1801_v58 = vand.u32 2147483647, %v1737_v7  ;;  %v1674_v37 = vadd.f32 %v1610_v34, %v1481_v54  ;;  %v1613_v61 = vmul.f32 %v3428_v32, %v1548_v22  ;;  %v1547_v59 = vmul.f32 %v2073_v17, %v2073_v17  ;;  %v2075_v33 = vpop.eup %2074  ;;  %v605_v24 = vpop.xlane.xlu0 %604 }
 0x162   : > { %v1740_v52 = vadd.f32 %v3497_v46, %v1675_v55  ;;  %v1483_v21 = vmul.f32 %v4632_v14, %v1418_v50  ;;  %2078 = vtanh.f32 %v968_v27  ;;  %v1421_v54 = vmul.f32 %v2075_v33, %v2075_v33  ;;  %v4637_v55 = vld [vmem:[#allocation25_spill] sm:$0xff] }
 0x163   : > { %1866 = vst.msk [vmem:[%s3834_s8 + $0x20] sm:$0xff] %vm1861_vm2, %v1801_v58  ;;  %v1739_v48 = vadd.f32 %v3497_v46, %v1674_v37  ;;  %v1677_v40 = vadd.f32 %v1613_v61, %v1484_v15  ;;  %v1612_v60 = vmul.f32 %v3428_v32, %v1547_v59  ;;  %2080 = vtanh.f32 %v1228_v44  ;;  %v614_v59 = vpop.xlane.xlu1 %613 }
 0x164   : > { %v1804_v10 = vand.u32 2147483647, %v1740_v52  ;;  %v841_v30 = vmul.f32 %v3208_v12, %v602_v23  ;;  %v1101_v42 = vmul.f32 %v3223_v47, %v602_v23  ;;  %v1486_v22 = vmul.f32 %v4632_v14, %v1421_v54 }
 0x165   : > { %v1803_v7 = vand.u32 2147483647, %v1739_v48  ;;  %v1742_v34 = vadd.f32 %v3497_v46, %v1677_v40  ;;  %v1676_v27 = vadd.f32 %v1612_v60, %v1483_v21  ;;  %v840_v50 = vmul.f32 %v3208_v12, %v599_v16  ;;  %v4638_v48 = vld [vmem:[#allocation26_spill] sm:$0xff] }
 0x166   : > { %1869 = vst.msk [vmem:[%s3834_s8 + $0x38] sm:$0xff] %vm1861_vm2, %v1804_v10  ;;  %v905_v17 = vadd.f32 %v841_v30, %v3323_v4  ;;  %v1165_v15 = vadd.f32 %v1101_v42, %v4637_v55  ;;  %v1100_v6 = vmul.f32 %v3223_v47, %v599_v16  ;;  %v843_v37 = vmul.f32 %v3208_v12, %v608_v35  ;;  %v611_v30 = vpop.xlane.xlu0 %610 }
 0x167   : > { %v2077_v53 = vpop.eup %2076  ;;  %1868 = vst.msk [vmem:[%s3834_s8 + $0x30] sm:$0xff] %vm1861_vm2, %v1803_v7  ;;  %v1806_v23 = vand.u32 2147483647, %v1742_v34  ;;  %v1741_v58 = vadd.f32 %v3497_v46, %v1676_v27  ;;  %v1103_v61 = vmul.f32 %v3223_v47, %v608_v35  ;;  %v904_v21 = vadd.f32 %v840_v50, %v3331_v39  ;;  %v620_v50 = vpop.xlane.xlu1 %619 }
 0x168   : > { %v1550_v33 = vmul.f32 %v2077_v53, %v2077_v53  ;;  %v971_v4 = vadd.f32 %v4621_v1, %v905_v17  ;;  %v1231_v52 = vadd.f32 %v3359_v19, %v1165_v15  ;;  %v1164_v44 = vadd.f32 %v1100_v6, %v3335_v5 }
 0x169   : > { %1871 = vst.msk [vmem:[%s3834_s8 + $0x48] sm:$0xff] %vm1861_vm2, %v1806_v23  ;;  %v1805_v16 = vand.u32 2147483647, %v1741_v58  ;;  %v907_v40 = vadd.f32 %v843_v37, %v4638_v48  ;;  %v1167_v60 = vadd.f32 %v1103_v61, %v3343_v49  ;;  %v970_v54 = vadd.f32 %v4621_v1, %v904_v21  ;;  %v4639_v49 = vld [vmem:[#allocation27_spill] sm:$0xff]  ;;  %v4640_v58 = vld [vmem:[#allocation28_spill] sm:$0xff]  ;;  %v4641_v61 = vld [vmem:[#allocation29_spill] sm:$0xff] }
 0x16a   : > { %v1615_v35 = vmul.f32 %v3428_v32, %v1550_v33  ;;  %2082 = vtanh.f32 %v971_v4  ;;  %v842_v10 = vmul.f32 %v3208_v12, %v605_v24  ;;  %v1230_v39 = vadd.f32 %v3359_v19, %v1164_v44  ;;  %v617_v21 = vpop.xlane.xlu0 %616 }
 0x16b   : > { %1870 = vst.msk [vmem:[%s3834_s8 + $0x40] sm:$0xff] %vm1861_vm2, %v1805_v16  ;;  %2084 = vtanh.f32 %v1231_v52  ;;  %v973_v42 = vadd.f32 %v4621_v1, %v907_v40  ;;  %v1233_v5 = vadd.f32 %v3359_v19, %v1167_v60  ;;  %v1102_v27 = vmul.f32 %v3223_v47, %v605_v24 }
 0x16c   : > { %v1679_v7 = vadd.f32 %v1615_v35, %v1486_v22  ;;  %2086 = vtanh.f32 %v970_v54  ;;  %v906_v34 = vadd.f32 %v842_v10, %v4639_v49  ;;  %v845_v17 = vmul.f32 %v3208_v12, %v614_v59  ;;  %v4642_v54 = vld [vmem:[#allocation30_spill] sm:$0xff] }
 0x16d   : > { %2088 = vtanh.f32 %v1230_v39  ;;  %v1105_v55 = vmul.f32 %v3223_v47, %v614_v59  ;;  %v844_v15 = vmul.f32 %v3208_v12, %v611_v30  ;;  %v1166_v22 = vadd.f32 %v1102_v27, %v3351_v45 }
 0x16e   : > { %v1744_v6 = vadd.f32 %v3497_v46, %v1679_v7  ;;  %2090 = vtanh.f32 %v973_v42  ;;  %v972_v53 = vadd.f32 %v4621_v1, %v906_v34  ;;  %v909_v24 = vadd.f32 %v845_v17, %v4640_v58  ;;  %v4644_v17 = vld [vmem:[#allocation32_spill] sm:$0xff] }
 0x16f   : > { %v2079_v23 = vpop.eup %2078  ;;  %2092 = vtanh.f32 %v1233_v5  ;;  %v1169_v37 = vadd.f32 %v1105_v55, %v3363_v57  ;;  %v908_v33 = vadd.f32 %v844_v15, %v4641_v61  ;;  %v1232_v52 = vadd.f32 %v3359_v19, %v1166_v22  ;;  %v626_v5 = vpop.xlane.xlu1 %625 }
 0x170   : > { %v1808_v59 = vand.u32 2147483647, %v1744_v6  ;;  %v1420_v4 = vmul.f32 %v2079_v23, %v2079_v23  ;;  %2094 = vtanh.f32 %v972_v53  ;;  %v2081_v16 = vpop.eup %2080  ;;  %v975_v44 = vadd.f32 %v4621_v1, %v909_v24  ;;  %v4645_v53 = vld [vmem:[#allocation33_spill] sm:$0xff] }
 0x171   : > { %v1235_v45 = vadd.f32 %v3359_v19, %v1169_v37  ;;  %v974_v48 = vadd.f32 %v4621_v1, %v908_v33  ;;  %v1104_v40 = vmul.f32 %v3223_v47, %v611_v30  ;;  %v1549_v60 = vmul.f32 %v2081_v16, %v2081_v16  ;;  %v4643_v30 = vld [vmem:[#allocation31_spill] sm:$0xff] }
 0x172   : > { %1873 = vst.msk [vmem:[%s3834_s8 + $0x58] sm:$0xff] %vm1861_vm2, %v1808_v59  ;;  %v1485_v57 = vmul.f32 %v4632_v14, %v1420_v4  ;;  %2096 = vtanh.f32 %v1232_v52  ;;  %v847_v35 = vmul.f32 %v3208_v12, %v620_v50  ;;  %v1107_v39 = vmul.f32 %v3223_v47, %v620_v50 }
 0x173   : > { %2098 = vtanh.f32 %v975_v44  ;;  %v1168_v10 = vadd.f32 %v1104_v40, %v4642_v54  ;;  %v846_v42 = vmul.f32 %v3208_v12, %v617_v21  ;;  %v1614_v7 = vmul.f32 %v3428_v32, %v1549_v60  ;;  %v4646_v44 = vld [vmem:[#allocation34_spill] sm:$0xff] }
 0x174   : > { %2100 = vtanh.f32 %v1235_v45  ;;  %v911_v49 = vadd.f32 %v847_v35, %v4643_v30  ;;  %v1106_v34 = vmul.f32 %v3223_v47, %v617_v21  ;;  %v1171_v55 = vadd.f32 %v1107_v39, %v4644_v17 }
 0x175   : > { %v1234_v27 = vadd.f32 %v3359_v19, %v1168_v10  ;;  %2102 = vtanh.f32 %v974_v48  ;;  %v910_v15 = vadd.f32 %v846_v42, %v3387_v51  ;;  %v1678_v6 = vadd.f32 %v1614_v7, %v1485_v57  ;;  %v623_v48 = vpop.xlane.xlu0 %622 }
 0x176   : > { %v977_v50 = vadd.f32 %v4621_v1, %v911_v49  ;;  %v1170_v22 = vadd.f32 %v1106_v34, %v4645_v53  ;;  %v849_v23 = vmul.f32 %v3208_v12, %v626_v5  ;;  %v1237_v24 = vadd.f32 %v3359_v19, %v1171_v55 }
 0x177   : > { %v2083_v58 = vpop.eup %2082  ;;  %2104 = vtanh.f32 %v1234_v27  ;;  %v976_v37 = vadd.f32 %v4621_v1, %v910_v15  ;;  %v1109_v61 = vmul.f32 %v3223_v47, %v626_v5  ;;  %v1743_v59 = vadd.f32 %v3497_v46, %v1678_v6  ;;  %v632_v15 = vpop.xlane.xlu1 %631 }
 0x178   : > { %v2085_v33 = vpop.eup %2084  ;;  %v1423_v4 = vmul.f32 %v2083_v58, %v2083_v58  ;;  %2106 = vtanh.f32 %v977_v50  ;;  %v1236_v51 = vadd.f32 %v3359_v19, %v1170_v22  ;;  %v913_v16 = vadd.f32 %v849_v23, %v3395_v3 }
 0x179   : > { %v2087_v52 = vpop.eup %2086  ;;  %v1552_v21 = vmul.f32 %v2085_v33, %v2085_v33  ;;  %2108 = vtanh.f32 %v1237_v24  ;;  %v1173_v45 = vadd.f32 %v1109_v61, %v4646_v44  ;;  %v1807_v57 = vand.u32 2147483647, %v1743_v59 }
 0x17a   : > { %v2089_v40 = vpop.eup %2088  ;;  %v1488_v60 = vmul.f32 %v4632_v14, %v1423_v4  ;;  %v1422_v35 = vmul.f32 %v2087_v52, %v2087_v52  ;;  %2110 = vtanh.f32 %v976_v37  ;;  %v979_v42 = vadd.f32 %v4621_v1, %v913_v16 }
 0x17b   : > { %v2091_v54 = vpop.eup %2090  ;;  %v1617_v10 = vmul.f32 %v3428_v32, %v1552_v21  ;;  %v1551_v39 = vmul.f32 %v2089_v40, %v2089_v40  ;;  %2112 = vtanh.f32 %v1236_v51  ;;  %1872 = vst.msk [vmem:[%s3834_s8 + $0x50] sm:$0xff] %vm1861_vm2, %v1807_v57  ;;  %v1239_v30 = vadd.f32 %v3359_v19, %v1173_v45 }
 0x17c   : > { %v2093_v5 = vpop.eup %2092  ;;  %v1487_v3 = vmul.f32 %v4632_v14, %v1422_v35  ;;  %v1425_v7 = vmul.f32 %v2091_v54, %v2091_v54  ;;  %v848_v49 = vmul.f32 %v3208_v12, %v623_v48  ;;  %2114 = vtanh.f32 %v979_v42 }
 0x17d   : > { %v2095_v34 = vpop.eup %2094  ;;  %v1681_v27 = vadd.f32 %v1617_v10, %v1488_v60  ;;  %v1616_v17 = vmul.f32 %v3428_v32, %v1551_v39  ;;  %v1554_v55 = vmul.f32 %v2093_v5, %v2093_v5  ;;  %2116 = vtanh.f32 %v1239_v30 }
 0x17e   : > { %v1490_v6 = vmul.f32 %v4632_v14, %v1425_v7  ;;  %v1424_v50 = vmul.f32 %v2095_v34, %v2095_v34  ;;  %v912_v53 = vadd.f32 %v848_v49, %v3403_v9  ;;  %v1108_v37 = vmul.f32 %v3223_v47, %v623_v48  ;;  %v4647_v7 = vld [vmem:[#allocation35_spill] sm:$0xff] }
 0x17f   : > { %v2097_v22 = vpop.eup %2096  ;;  %v1746_v23 = vadd.f32 %v3497_v46, %v1681_v27  ;;  %v1680_v58 = vadd.f32 %v1616_v17, %v1487_v3  ;;  %v1619_v24 = vmul.f32 %v3428_v32, %v1554_v55  ;;  %v851_v51 = vmul.f32 %v3208_v12, %v632_v15 }
 0x180   : > { %v2099_v61 = vpop.eup %2098  ;;  %v1489_v33 = vmul.f32 %v4632_v14, %v1424_v50  ;;  %v1553_v59 = vmul.f32 %v2097_v22, %v2097_v22  ;;  %v978_v4 = vadd.f32 %v4621_v1, %v912_v53  ;;  %v1172_v57 = vadd.f32 %v1108_v37, %v3407_v63  ;;  %v629_v22 = vpop.xlane.xlu0 %628 }
 0x181   : > { %v2101_v52 = vpop.eup %2100  ;;  %v1810_v21 = vand.u32 2147483647, %v1746_v23  ;;  %v1745_v9 = vadd.f32 %v3497_v46, %v1680_v58  ;;  %v1683_v16 = vadd.f32 %v1619_v24, %v1490_v6  ;;  %v1427_v44 = vmul.f32 %v2099_v61, %v2099_v61 }
 0x182   : > { %v2103_v45 = vpop.eup %2102  ;;  %v1618_v40 = vmul.f32 %v3428_v32, %v1553_v59  ;;  %v1556_v48 = vmul.f32 %v2101_v52, %v2101_v52  ;;  %2118 = vtanh.f32 %v978_v4  ;;  %v1238_v3 = vadd.f32 %v3359_v19, %v1172_v57  ;;  %v638_v52 = vpop.xlane.xlu1 %637 }
 0x183   : > { %1875 = vst.msk [vmem:[%s3834_s8 + $0x68] sm:$0xff] %vm1861_vm2, %v1810_v21  ;;  %v1809_v60 = vand.u32 2147483647, %v1745_v9  ;;  %v1748_v35 = vadd.f32 %v3497_v46, %v1683_v16  ;;  %v1492_v54 = vmul.f32 %v4632_v14, %v1427_v44  ;;  %v1426_v10 = vmul.f32 %v2103_v45, %v2103_v45 }
 0x184   : > { %v2105_v39 = vpop.eup %2104  ;;  %v1682_v42 = vadd.f32 %v1618_v40, %v1489_v33  ;;  %v1621_v5 = vmul.f32 %v3428_v32, %v1556_v48  ;;  %v915_v30 = vadd.f32 %v851_v51, %v4647_v7  ;;  %v1111_v17 = vmul.f32 %v3223_v47, %v632_v15  ;;  %v635_v7 = vpop.xlane.xlu0 %634 }
 0x185   : > { %v2107_v49 = vpop.eup %2106  ;;  %1874 = vst.msk [vmem:[%s3834_s8 + $0x60] sm:$0xff] %vm1861_vm2, %v1809_v60  ;;  %v1812_v63 = vand.u32 2147483647, %v1748_v35  ;;  %v1491_v34 = vmul.f32 %v4632_v14, %v1426_v10  ;;  %v1555_v27 = vmul.f32 %v2105_v39, %v2105_v39  ;;  %2120 = vtanh.f32 %v1238_v3 }
 0x186   : > { %v2109_v55 = vpop.eup %2108  ;;  %v1747_v6 = vadd.f32 %v3497_v46, %v1682_v42  ;;  %v1685_v50 = vadd.f32 %v1621_v5, %v1492_v54  ;;  %v1429_v53 = vmul.f32 %v2107_v49, %v2107_v49  ;;  %v981_v37 = vadd.f32 %v4621_v1, %v915_v30  ;;  %v4648_v42 = vld [vmem:[#allocation36_spill] sm:$0xff] }
 0x187   : > { %v2111_v23 = vpop.eup %2110  ;;  %1877 = vst.msk [vmem:[%s3834_s8 + $0x78] sm:$0xff] %vm1861_vm2, %v1812_v63  ;;  %v1620_v58 = vmul.f32 %v3428_v32, %v1555_v27  ;;  %v1558_v24 = vmul.f32 %v2109_v55, %v2109_v55  ;;  %v1175_v61 = vadd.f32 %v1111_v17, %v3415_v20  ;;  %v850_v48 = vmul.f32 %v3208_v12, %v629_v22 }
 0x188   : > { %v2113_v33 = vpop.eup %2112  ;;  %v1811_v15 = vand.u32 2147483647, %v1747_v6  ;;  %v1750_v59 = vadd.f32 %v3497_v46, %v1685_v50  ;;  %v1494_v4 = vmul.f32 %v4632_v14, %v1429_v53  ;;  %v1428_v51 = vmul.f32 %v2111_v23, %v2111_v23  ;;  %v644_v50 = vpop.xlane.xlu1 %643 }
 0x189   : > { %v1684_v21 = vadd.f32 %v1620_v58, %v1491_v34  ;;  %v1623_v9 = vmul.f32 %v3428_v32, %v1558_v24  ;;  %v1557_v16 = vmul.f32 %v2113_v33, %v2113_v33  ;;  %v1241_v44 = vadd.f32 %v3359_v19, %v1175_v61  ;;  %v2115_v45 = vpop.eup %2114 }
 0x18a   : > { %1876 = vst.msk [vmem:[%s3834_s8 + $0x70] sm:$0xff] %vm1861_vm2, %v1811_v15  ;;  %v1814_v40 = vand.u32 2147483647, %v1750_v59  ;;  %v1493_v20 = vmul.f32 %v4632_v14, %v1428_v51  ;;  %2122 = vtanh.f32 %v981_v37  ;;  %v2117_v57 = vpop.eup %2116  ;;  %v1431_v10 = vmul.f32 %v2115_v45, %v2115_v45  ;;  %v4649_v15 = vld [vmem:[#allocation37_spill] sm:$0xff]  ;;  %v641_v45 = vpop.xlane.xlu0 %640 }
 0x18b   : > { %v1749_v60 = vadd.f32 %v3497_v46, %v1684_v21  ;;  %v1687_v35 = vadd.f32 %v1623_v9, %v1494_v4  ;;  %v1622_v54 = vmul.f32 %v3428_v32, %v1557_v16  ;;  %v1560_v39 = vmul.f32 %v2117_v57, %v2117_v57  ;;  %v4650_v4 = vld [vmem:[#allocation38_spill] sm:$0xff]  ;;  %v4651_v21 = vld [vmem:[#allocation39_spill] sm:$0xff] }
 0x18c   : > { %1879 = vst.msk [vmem:[%s3834_s8 + $0x88] sm:$0xff] %vm1861_vm2, %v1814_v40  ;;  %2124 = vtanh.f32 %v1241_v44  ;;  %v914_v5 = vadd.f32 %v850_v48, %v4648_v42  ;;  %v1110_v3 = vmul.f32 %v3223_v47, %v629_v22  ;;  %v1496_v34 = vmul.f32 %v4632_v14, %v1431_v10  ;;  %v4652_v10 = vld [vmem:[#allocation40_spill] sm:$0xff] }
 0x18d   : > { %v1813_v30 = vand.u32 2147483647, %v1749_v60  ;;  %v1752_v49 = vadd.f32 %v3497_v46, %v1687_v35  ;;  %v1686_v63 = vadd.f32 %v1622_v54, %v1493_v20  ;;  %v1625_v27 = vmul.f32 %v3428_v32, %v1560_v39 }
 0x18e   : > { %v980_v17 = vadd.f32 %v4621_v1, %v914_v5  ;;  %v1174_v55 = vadd.f32 %v1110_v3, %v3423_v31  ;;  %v853_v6 = vmul.f32 %v3208_v12, %v638_v52  ;;  %v1113_v58 = vmul.f32 %v3223_v47, %v638_v52  ;;  %v650_v5 = vpop.xlane.xlu1 %649 }
 0x18f   : > { %v2119_v53 = vpop.eup %2118  ;;  %1878 = vst.msk [vmem:[%s3834_s8 + $0x80] sm:$0xff] %vm1861_vm2, %v1813_v30  ;;  %v1816_v22 = vand.u32 2147483647, %v1752_v49  ;;  %v1751_v23 = vadd.f32 %v3497_v46, %v1686_v63  ;;  %v852_v24 = vmul.f32 %v3208_v12, %v635_v7  ;;  %v1689_v37 = vadd.f32 %v1625_v27, %v1496_v34  ;;  %v4653_v34 = vld [vmem:[#allocation41_spill] sm:$0xff] }
 0x190   : > { %v1430_v61 = vmul.f32 %v2119_v53, %v2119_v53  ;;  %v1240_v33 = vadd.f32 %v3359_v19, %v1174_v55  ;;  %2126 = vtanh.f32 %v980_v17  ;;  %v917_v59 = vadd.f32 %v853_v6, %v4649_v15 }
 0x191   : > { %1881 = vst.msk [vmem:[%s3834_s8 + $0x98] sm:$0xff] %vm1861_vm2, %v1816_v22  ;;  %v1815_v31 = vand.u32 2147483647, %v1751_v23  ;;  %v1177_v51 = vadd.f32 %v1113_v58, %v4650_v4  ;;  %v916_v9 = vadd.f32 %v852_v24, %v4651_v21  ;;  %v1754_v16 = vadd.f32 %v3497_v46, %v1689_v37  ;;  %v647_v58 = vpop.xlane.xlu0 %646 }
 0x192   : > { %v1495_v52 = vmul.f32 %v4632_v14, %v1430_v61  ;;  %2128 = vtanh.f32 %v1240_v33  ;;  %v1112_v44 = vmul.f32 %v3223_v47, %v635_v7  ;;  %v2121_v40 = vpop.eup %2120  ;;  %v983_v20 = vadd.f32 %v4621_v1, %v917_v59  ;;  %v656_v59 = vpop.xlane.xlu1 %655 }
 0x193   : > { %1880 = vst.msk [vmem:[%s3834_s8 + $0x90] sm:$0xff] %vm1861_vm2, %v1815_v31  ;;  %v1243_v48 = vadd.f32 %v3359_v19, %v1177_v51  ;;  %v982_v57 = vadd.f32 %v4621_v1, %v916_v9  ;;  %v855_v60 = vmul.f32 %v3208_v12, %v644_v50  ;;  %v1818_v35 = vand.u32 2147483647, %v1754_v16 }
 0x194   : > { %v1559_v54 = vmul.f32 %v2121_v40, %v2121_v40  ;;  %v1176_v39 = vadd.f32 %v1112_v44, %v4652_v10  ;;  %v1115_v42 = vmul.f32 %v3223_v47, %v644_v50  ;;  %2130 = vtanh.f32 %v983_v20  ;;  %v4655_v20 = vld [vmem:[#allocation43_spill] sm:$0xff] }
 0x195   : > { %v919_v3 = vadd.f32 %v855_v60, %v3452_v26  ;;  %v854_v7 = vmul.f32 %v3208_v12, %v641_v45  ;;  %v1114_v30 = vmul.f32 %v3223_v47, %v641_v45  ;;  %1883 = vst.msk [vmem:[%s3834_s8 + $0xa8] sm:$0xff] %vm1861_vm2, %v1818_v35  ;;  %2132 = vtanh.f32 %v1243_v48  ;;  %v4654_v26 = vld [vmem:[#allocation42_spill] sm:$0xff]  ;;  %v653_v10 = vpop.xlane.xlu0 %652 }
 0x196   : > { %v1624_v49 = vmul.f32 %v3428_v32, %v1559_v54  ;;  %v1242_v63 = vadd.f32 %v3359_v19, %v1176_v39  ;;  %v1179_v27 = vadd.f32 %v1115_v42, %v4653_v34  ;;  %2134 = vtanh.f32 %v982_v57  ;;  %v4657_v34 = vld [vmem:[#allocation45_spill] sm:$0xff] }
 0x197   : > { %v2123_v17 = vpop.eup %2122  ;;  %v985_v55 = vadd.f32 %v4621_v1, %v919_v3  ;;  %v918_v6 = vadd.f32 %v854_v7, %v3460_v18  ;;  %v1178_v50 = vadd.f32 %v1114_v30, %v4654_v26  ;;  %v857_v33 = vmul.f32 %v3208_v12, %v650_v5 }
 0x198   : > { %v1688_v53 = vadd.f32 %v1624_v49, %v1495_v52  ;;  %v1433_v22 = vmul.f32 %v2123_v17, %v2123_v17  ;;  %2136 = vtanh.f32 %v1242_v63  ;;  %v1245_v23 = vadd.f32 %v3359_v19, %v1179_v27 }
 0x199   : > { %v2125_v24 = vpop.eup %2124  ;;  %2138 = vtanh.f32 %v985_v55  ;;  %v984_v37 = vadd.f32 %v4621_v1, %v918_v6  ;;  %v1244_v61 = vadd.f32 %v3359_v19, %v1178_v50  ;;  %v921_v4 = vadd.f32 %v857_v33, %v3468_v38 }
 0x19a   : > { %v1753_v31 = vadd.f32 %v3497_v46, %v1688_v53  ;;  %v1498_v18 = vmul.f32 %v4632_v14, %v1433_v22  ;;  %v1562_v15 = vmul.f32 %v2125_v24, %v2125_v24  ;;  %2140 = vtanh.f32 %v1245_v23 }
 0x19b   : > { %2142 = vtanh.f32 %v984_v37  ;;  %v1117_v51 = vmul.f32 %v3223_v47, %v650_v5  ;;  %v856_v21 = vmul.f32 %v3208_v12, %v647_v58  ;;  %v1116_v52 = vmul.f32 %v3223_v47, %v647_v58  ;;  %v4658_v58 = vld [vmem:[#allocation46_spill] sm:$0xff] }
 0x19c   : > { %v1817_v9 = vand.u32 2147483647, %v1753_v31  ;;  %v1627_v16 = vmul.f32 %v3428_v32, %v1562_v15  ;;  %2144 = vtanh.f32 %v1244_v61  ;;  %v987_v45 = vadd.f32 %v4621_v1, %v921_v4 }
 0x19d   : > { %v2127_v44 = vpop.eup %2126  ;;  %v1181_v40 = vadd.f32 %v1117_v51, %v3472_v28  ;;  %v920_v48 = vadd.f32 %v856_v21, %v4655_v20  ;;  %v859_v57 = vmul.f32 %v3208_v12, %v656_v59  ;;  %v1180_v35 = vadd.f32 %v1116_v52, %v3480_v36  ;;  %v4656_v28 = vld [vmem:[#allocation44_spill] sm:$0xff] }
 0x19e   : > { %1882 = vst.msk [vmem:[%s3834_s8 + $0xa0] sm:$0xff] %vm1861_vm2, %v1817_v9  ;;  %v1691_v38 = vadd.f32 %v1627_v16, %v1498_v18  ;;  %v1432_v60 = vmul.f32 %v2127_v44, %v2127_v44  ;;  %v1119_v54 = vmul.f32 %v3223_v47, %v656_v59  ;;  %2146 = vtanh.f32 %v987_v45  ;;  %v662_v18 = vpop.xlane.xlu1 %661 }
 0x19f   : > { %v2129_v39 = vpop.eup %2128  ;;  %v1247_v42 = vadd.f32 %v3359_v19, %v1181_v40  ;;  %v986_v5 = vadd.f32 %v4621_v1, %v920_v48  ;;  %v923_v3 = vadd.f32 %v859_v57, %v4656_v28  ;;  %v1246_v63 = vadd.f32 %v3359_v19, %v1180_v35 }
 0x1a0   : > { %v1756_v7 = vadd.f32 %v3497_v46, %v1691_v38  ;;  %v1497_v30 = vmul.f32 %v4632_v14, %v1432_v60  ;;  %v1561_v49 = vmul.f32 %v2129_v39, %v2129_v39  ;;  %v1183_v27 = vadd.f32 %v1119_v54, %v4657_v34  ;;  %v659_v54 = vpop.xlane.xlu0 %658 }
 0x1a1   : > { %2148 = vtanh.f32 %v1247_v42  ;;  %v989_v36 = vadd.f32 %v4621_v1, %v923_v3  ;;  %v858_v17 = vmul.f32 %v3208_v12, %v653_v10  ;;  %v2131_v55 = vpop.eup %2130  ;;  %v1118_v50 = vmul.f32 %v3223_v47, %v653_v10 }
 0x1a2   : > { %v1820_v6 = vand.u32 2147483647, %v1756_v7  ;;  %v1626_v26 = vmul.f32 %v3428_v32, %v1561_v49  ;;  %2150 = vtanh.f32 %v986_v5  ;;  %v2133_v53 = vpop.eup %2132  ;;  %v1435_v22 = vmul.f32 %v2131_v55, %v2131_v55  ;;  %v4659_v5 = vld [vmem:[#allocation47_spill] sm:$0xff] }
 0x1a3   : > { %2152 = vtanh.f32 %v1246_v63  ;;  %v1249_v23 = vadd.f32 %v3359_v19, %v1183_v27  ;;  %v922_v24 = vadd.f32 %v858_v17, %v4658_v58  ;;  %v2135_v37 = vpop.eup %2134  ;;  %v1564_v33 = vmul.f32 %v2133_v53, %v2133_v53 }
 0x1a4   : > { %1885 = vst.msk [vmem:[%s3834_s8 + $0xb8] sm:$0xff] %vm1861_vm2, %v1820_v6  ;;  %v1690_v61 = vadd.f32 %v1626_v26, %v1497_v30  ;;  %2154 = vtanh.f32 %v989_v36  ;;  %v1182_v31 = vadd.f32 %v1118_v50, %v3501_v56  ;;  %v1500_v59 = vmul.f32 %v4632_v14, %v1435_v22 }
 0x1a5   : > { %v2137_v15 = vpop.eup %2136  ;;  %v1434_v4 = vmul.f32 %v2135_v37, %v2135_v37  ;;  %2156 = vtanh.f32 %v1249_v23  ;;  %v988_v51 = vadd.f32 %v4621_v1, %v922_v24  ;;  %v1629_v16 = vmul.f32 %v3428_v32, %v1564_v33  ;;  %v4660_v23 = vld [vmem:[#allocation48_spill] sm:$0xff] }
 0x1a6   : > { %v2139_v21 = vpop.eup %2138  ;;  %v1755_v9 = vadd.f32 %v3497_v46, %v1690_v61  ;;  %v1563_v52 = vmul.f32 %v2137_v15, %v2137_v15  ;;  %v1248_v44 = vadd.f32 %v3359_v19, %v1182_v31  ;;  %v861_v20 = vmul.f32 %v3208_v12, %v662_v18 }
 0x1a7   : > { %v2141_v45 = vpop.eup %2140  ;;  %v1499_v56 = vmul.f32 %v4632_v14, %v1434_v4  ;;  %v1437_v40 = vmul.f32 %v2139_v21, %v2139_v21  ;;  %2158 = vtanh.f32 %v988_v51  ;;  %v1693_v38 = vadd.f32 %v1629_v16, %v1500_v59 }
 0x1a8   : > { %v2143_v48 = vpop.eup %2142  ;;  %v1819_v57 = vand.u32 2147483647, %v1755_v9  ;;  %v1628_v60 = vmul.f32 %v3428_v32, %v1563_v52  ;;  %v1566_v35 = vmul.f32 %v2141_v45, %v2141_v45  ;;  %2160 = vtanh.f32 %v1248_v44  ;;  %v4661_v44 = vld [vmem:[#allocation49_spill] sm:$0xff] }
 0x1a9   : > { %v2145_v10 = vpop.eup %2144  ;;  %v1502_v39 = vmul.f32 %v4632_v14, %v1437_v40  ;;  %v1436_v42 = vmul.f32 %v2143_v48, %v2143_v48  ;;  %v925_v28 = vadd.f32 %v861_v20, %v4659_v5  ;;  %v1758_v3 = vadd.f32 %v3497_v46, %v1693_v38 }
 0x1aa   : > { %1884 = vst.msk [vmem:[%s3834_s8 + $0xb0] sm:$0xff] %vm1861_vm2, %v1819_v57  ;;  %v1692_v7 = vadd.f32 %v1628_v60, %v1499_v56  ;;  %v1631_v30 = vmul.f32 %v3428_v32, %v1566_v35  ;;  %v1565_v49 = vmul.f32 %v2145_v10, %v2145_v10  ;;  %v1121_v34 = vmul.f32 %v3223_v47, %v662_v18  ;;  %v668_v18 = vpop.xlane.xlu1 %667  ;;  %v665_v10 = vpop.xlane.xlu0 %664 }
 0x1ab   : > { %v1501_v63 = vmul.f32 %v4632_v14, %v1436_v42  ;;  %v991_v36 = vadd.f32 %v4621_v1, %v925_v28  ;;  %v860_v27 = vmul.f32 %v3208_v12, %v659_v54  ;;  %v2147_v17 = vpop.eup %2146  ;;  %v1822_v55 = vand.u32 2147483647, %v1758_v3 }
 0x1ac   : > { %v1757_v6 = vadd.f32 %v3497_v46, %v1692_v7  ;;  %v1695_v26 = vadd.f32 %v1631_v30, %v1502_v39  ;;  %v1630_v50 = vmul.f32 %v3428_v32, %v1565_v49  ;;  %v1439_v53 = vmul.f32 %v2147_v17, %v2147_v17 }
 0x1ad   : > { %v1185_v22 = vadd.f32 %v1121_v34, %v3509_v0  ;;  %2162 = vtanh.f32 %v991_v36  ;;  %v924_v58 = vadd.f32 %v860_v27, %v4660_v23  ;;  %1887 = vst.msk [vmem:[%s3834_s8 + $0xc8] sm:$0xff] %vm1861_vm2, %v1822_v55  ;;  %v1120_v31 = vmul.f32 %v3223_v47, %v659_v54 }
 0x1ae   : > { %v2149_v24 = vpop.eup %2148  ;;  %v1821_v37 = vand.u32 2147483647, %v1757_v6  ;;  %v1760_v61 = vadd.f32 %v3497_v46, %v1695_v26  ;;  %v1694_v33 = vadd.f32 %v1630_v50, %v1501_v63  ;;  %v1504_v59 = vmul.f32 %v4632_v14, %v1439_v53  ;;  %v674_v27 = vpop.xlane.xlu1 %673  ;;  %v4662_v6 = vld [vmem:[#allocation50_spill] sm:$0xff] }
 0x1af   : > { %v2151_v15 = vpop.eup %2150  ;;  %v1568_v4 = vmul.f32 %v2149_v24, %v2149_v24  ;;  %v1251_v0 = vadd.f32 %v3359_v19, %v1185_v22  ;;  %v990_v51 = vadd.f32 %v4621_v1, %v924_v58  ;;  %v1184_v45 = vadd.f32 %v1120_v31, %v4661_v44 }
 0x1b0   : > { %v2153_v21 = vpop.eup %2152  ;;  %1886 = vst.msk [vmem:[%s3834_s8 + $0xc0] sm:$0xff] %vm1861_vm2, %v1821_v37  ;;  %v1824_v9 = vand.u32 2147483647, %v1760_v61  ;;  %v1759_v16 = vadd.f32 %v3497_v46, %v1694_v33  ;;  %v1438_v52 = vmul.f32 %v2151_v15, %v2151_v15  ;;  %v863_v48 = vmul.f32 %v3208_v12, %v668_v18  ;;  %v671_v33 = vpop.xlane.xlu0 %670  ;;  %v4663_v15 = vld [vmem:[#allocation51_spill] sm:$0xff] }
 0x1b1   : > { %v2155_v56 = vpop.eup %2154  ;;  %v1633_v40 = vmul.f32 %v3428_v32, %v1568_v4  ;;  %v1567_v20 = vmul.f32 %v2153_v21, %v2153_v21  ;;  %2164 = vtanh.f32 %v1251_v0  ;;  %v1250_v54 = vadd.f32 %v3359_v19, %v1184_v45 }
 0x1b2   : > { %v2157_v57 = vpop.eup %2156  ;;  %1889 = vst.msk [vmem:[%s3834_s8 + $0xd8] sm:$0xff] %vm1861_vm2, %v1824_v9  ;;  %v1823_v38 = vand.u32 2147483647, %v1759_v16  ;;  %v1503_v60 = vmul.f32 %v4632_v14, %v1438_v52  ;;  %v1441_v35 = vmul.f32 %v2155_v56, %v2155_v56  ;;  %2166 = vtanh.f32 %v990_v51  ;;  %v680_v45 = vpop.xlane.xlu1 %679 }
 0x1b3   : > { %v1697_v39 = vadd.f32 %v1633_v40, %v1504_v59  ;;  %v1632_v42 = vmul.f32 %v3428_v32, %v1567_v20  ;;  %v1570_v5 = vmul.f32 %v2157_v57, %v2157_v57  ;;  %2168 = vtanh.f32 %v1250_v54  ;;  %v4664_v40 = vld [vmem:[#allocation52_spill] sm:$0xff] }
 0x1b4   : > { %v2159_v28 = vpop.eup %2158  ;;  %1888 = vst.msk [vmem:[%s3834_s8 + $0xd0] sm:$0xff] %vm1861_vm2, %v1823_v38  ;;  %v1506_v3 = vmul.f32 %v4632_v14, %v1441_v35  ;;  %v927_v7 = vadd.f32 %v863_v48, %v3523_v62  ;;  %v1123_v30 = vmul.f32 %v3223_v47, %v668_v18  ;;  %v862_v50 = vmul.f32 %v3208_v12, %v665_v10 }
 0x1b5   : > { %v1762_v49 = vadd.f32 %v3497_v46, %v1697_v39  ;;  %v1696_v63 = vadd.f32 %v1632_v42, %v1503_v60  ;;  %v1635_v36 = vmul.f32 %v3428_v32, %v1570_v5  ;;  %v1440_v34 = vmul.f32 %v2159_v28, %v2159_v28  ;;  %v2161_v17 = vpop.eup %2160  ;;  %v677_v42 = vpop.xlane.xlu0 %676  ;;  %v4665_v28 = vld [vmem:[#allocation53_spill] sm:$0xff] }
 0x1b6   : > { %v993_v55 = vadd.f32 %v4621_v1, %v927_v7  ;;  %v1187_v26 = vadd.f32 %v1123_v30, %v4662_v6  ;;  %v1122_v53 = vmul.f32 %v3223_v47, %v665_v10  ;;  %v1569_v24 = vmul.f32 %v2161_v17, %v2161_v17  ;;  %v4667_v6 = vld [vmem:[#allocation55_spill] sm:$0xff] }
 0x1b7   : > { %v1826_v62 = vand.u32 2147483647, %v1762_v49  ;;  %v1761_v22 = vadd.f32 %v3497_v46, %v1696_v63  ;;  %v1699_v23 = vadd.f32 %v1635_v36, %v1506_v3  ;;  %v1505_v58 = vmul.f32 %v4632_v14, %v1440_v34  ;;  %v4666_v36 = vld [vmem:[#allocation54_spill] sm:$0xff] }
 0x1b8   : > { %v1253_v37 = vadd.f32 %v3359_v19, %v1187_v26  ;;  %2170 = vtanh.f32 %v993_v55  ;;  %v926_v61 = vadd.f32 %v862_v50, %v3531_v13  ;;  %v1186_v59 = vadd.f32 %v1122_v53, %v4663_v15 }
 0x1b9   : > { %1891 = vst.msk [vmem:[%s3834_s8 + $0xe8] sm:$0xff] %vm1861_vm2, %v1826_v62  ;;  %v1825_v31 = vand.u32 2147483647, %v1761_v22  ;;  %v1764_v18 = vadd.f32 %v3497_v46, %v1699_v23  ;;  %v865_v4 = vmul.f32 %v3208_v12, %v674_v27  ;;  %v1634_v51 = vmul.f32 %v3428_v32, %v1569_v24  ;;  %v686_v22 = vpop.xlane.xlu1 %685 }
 0x1ba   : > { %v2163_v0 = vpop.eup %2162  ;;  %2172 = vtanh.f32 %v1253_v37  ;;  %v992_v21 = vadd.f32 %v4621_v1, %v926_v61  ;;  %v1125_v9 = vmul.f32 %v3223_v47, %v674_v27  ;;  %v1252_v52 = vadd.f32 %v3359_v19, %v1186_v59  ;;  %v4668_v61 = vld [vmem:[#allocation56_spill] sm:$0xff] }
 0x1bb   : > { %1890 = vst.msk [vmem:[%s3834_s8 + $0xe0] sm:$0xff] %vm1861_vm2, %v1825_v31  ;;  %v1828_v13 = vand.u32 2147483647, %v1764_v18  ;;  %v1443_v16 = vmul.f32 %v2163_v0, %v2163_v0  ;;  %v929_v44 = vadd.f32 %v865_v4, %v3539_v8  ;;  %v1698_v56 = vadd.f32 %v1634_v51, %v1505_v58  ;;  %v683_v18 = vpop.xlane.xlu0 %682 }
 0x1bc   : > { %2174 = vtanh.f32 %v992_v21  ;;  %v1189_v20 = vadd.f32 %v1125_v9, %v4664_v40  ;;  %v864_v48 = vmul.f32 %v3208_v12, %v671_v33  ;;  %v1124_v60 = vmul.f32 %v3223_v47, %v671_v33  ;;  %v4671_v40 = vld [vmem:[#allocation59_spill] sm:$0xff] }
 0x1bd   : > { %1893 = vst.msk [vmem:[%s3834_s8 + $0xf8] sm:$0xff] %vm1861_vm2, %v1828_v13  ;;  %v1508_v57 = vmul.f32 %v4632_v14, %v1443_v16  ;;  %2176 = vtanh.f32 %v1252_v52  ;;  %v995_v38 = vadd.f32 %v4621_v1, %v929_v44  ;;  %v1763_v54 = vadd.f32 %v3497_v46, %v1698_v56  ;;  %v4669_v13 = vld [vmem:[#allocation57_spill] sm:$0xff] }
 0x1be   : > { %v2165_v35 = vpop.eup %2164  ;;  %v1255_v8 = vadd.f32 %v3359_v19, %v1189_v20  ;;  %v928_v10 = vadd.f32 %v864_v48, %v3547_v29  ;;  %v867_v39 = vmul.f32 %v3208_v12, %v680_v45  ;;  %v1188_v3 = vadd.f32 %v1124_v60, %v4665_v28 }
 0x1bf   : > { %v1572_v5 = vmul.f32 %v2165_v35, %v2165_v35  ;;  %2178 = vtanh.f32 %v995_v38  ;;  %v1127_v7 = vmul.f32 %v3223_v47, %v680_v45  ;;  %v2167_v30 = vpop.eup %2166  ;;  %v1827_v49 = vand.u32 2147483647, %v1763_v54  ;;  %v4670_v45 = vld [vmem:[#allocation58_spill] sm:$0xff] }
 0x1c0   : > { %2180 = vtanh.f32 %v1255_v8  ;;  %v994_v63 = vadd.f32 %v4621_v1, %v928_v10  ;;  %v931_v34 = vadd.f32 %v867_v39, %v4666_v36  ;;  %v2169_v27 = vpop.eup %2168  ;;  %v1442_v17 = vmul.f32 %v2167_v30, %v2167_v30  ;;  %v4672_v39 = vld [vmem:[#allocation60_spill] sm:$0xff] }
 0x1c1   : > { %v1637_v29 = vmul.f32 %v3428_v32, %v1572_v5  ;;  %v1254_v55 = vadd.f32 %v3359_v19, %v1188_v3  ;;  %v1191_v26 = vadd.f32 %v1127_v7, %v4667_v6  ;;  %1892 = vst.msk [vmem:[%s3834_s8 + $0xf0] sm:$0xff] %vm1861_vm2, %v1827_v49  ;;  %v1571_v50 = vmul.f32 %v2169_v27, %v2169_v27  ;;  %v692_v5 = vpop.xlane.xlu1 %691 }
 0x1c2   : > { %2182 = vtanh.f32 %v994_v63  ;;  %v997_v53 = vadd.f32 %v4621_v1, %v931_v34  ;;  %v866_v62 = vmul.f32 %v3208_v12, %v677_v42  ;;  %v1507_v58 = vmul.f32 %v4632_v14, %v1442_v17 }
 0x1c3   : > { %v1701_v23 = vadd.f32 %v1637_v29, %v1508_v57  ;;  %2184 = vtanh.f32 %v1254_v55  ;;  %v1257_v24 = vadd.f32 %v3359_v19, %v1191_v26  ;;  %v1636_v37 = vmul.f32 %v3428_v32, %v1571_v50  ;;  %v689_v55 = vpop.xlane.xlu0 %688 }
 0x1c4   : > { %2186 = vtanh.f32 %v997_v53  ;;  %v930_v33 = vadd.f32 %v866_v62, %v4668_v61  ;;  %v1126_v31 = vmul.f32 %v3223_v47, %v677_v42  ;;  %v869_v4 = vmul.f32 %v3208_v12, %v686_v22  ;;  %v4673_v53 = vld [vmem:[#allocation61_spill] sm:$0xff] }
 0x1c5   : > { %v2171_v15 = vpop.eup %2170  ;;  %v1766_v59 = vadd.f32 %v3497_v46, %v1701_v23  ;;  %2188 = vtanh.f32 %v1257_v24  ;;  %v1129_v0 = vmul.f32 %v3223_v47, %v686_v22  ;;  %v1700_v51 = vadd.f32 %v1636_v37, %v1507_v58  ;;  %v4674_v58 = vld [vmem:[#allocation62_spill] sm:$0xff] }
 0x1c6   : > { %v1445_v21 = vmul.f32 %v2171_v15, %v2171_v15  ;;  %v996_v9 = vadd.f32 %v4621_v1, %v930_v33  ;;  %v1190_v16 = vadd.f32 %v1126_v31, %v4669_v13  ;;  %v933_v56 = vadd.f32 %v869_v4, %v4670_v45 }
 0x1c7   : > { %v2173_v52 = vpop.eup %2172  ;;  %v1830_v44 = vand.u32 2147483647, %v1766_v59  ;;  %v1193_v20 = vadd.f32 %v1129_v0, %v4671_v40  ;;  %v868_v48 = vmul.f32 %v3208_v12, %v683_v18  ;;  %v1765_v57 = vadd.f32 %v3497_v46, %v1700_v51 }
 0x1c8   : > { %v1510_v38 = vmul.f32 %v4632_v14, %v1445_v21  ;;  %v1574_v60 = vmul.f32 %v2173_v52, %v2173_v52  ;;  %v1256_v35 = vadd.f32 %v3359_v19, %v1190_v16  ;;  %2190 = vtanh.f32 %v996_v9  ;;  %v4675_v52 = vld [vmem:[#allocation63_spill] sm:$0xff] }
 0x1c9   : > { %v2175_v54 = vpop.eup %2174  ;;  %1895 = vst.msk [vmem:[%s3834_s8 + $0x108] sm:$0xff] %vm1861_vm2, %v1830_v44  ;;  %v999_v8 = vadd.f32 %v4621_v1, %v933_v56  ;;  %v1259_v10 = vadd.f32 %v3359_v19, %v1193_v20  ;;  %v932_v42 = vadd.f32 %v868_v48, %v4672_v39  ;;  %v1829_v3 = vand.u32 2147483647, %v1765_v57  ;;  %v698_v48 = vpop.xlane.xlu1 %697 }
 0x1ca   : > { %v2177_v28 = vpop.eup %2176  ;;  %v1639_v7 = vmul.f32 %v3428_v32, %v1574_v60  ;;  %v1444_v30 = vmul.f32 %v2175_v54, %v2175_v54  ;;  %2192 = vtanh.f32 %v1256_v35  ;;  %v1128_v36 = vmul.f32 %v3223_v47, %v683_v18 }
 0x1cb   : > { %v1573_v49 = vmul.f32 %v2177_v28, %v2177_v28  ;;  %2194 = vtanh.f32 %v999_v8  ;;  %v998_v63 = vadd.f32 %v4621_v1, %v932_v42  ;;  %1894 = vst.msk [vmem:[%s3834_s8 + $0x100] sm:$0xff] %vm1861_vm2, %v1829_v3  ;;  %v871_v17 = vmul.f32 %v3208_v12, %v692_v5 }
 0x1cc   : > { %v2179_v34 = vpop.eup %2178  ;;  %v1703_v27 = vadd.f32 %v1639_v7, %v1510_v38  ;;  %v1509_v29 = vmul.f32 %v4632_v14, %v1444_v30  ;;  %2196 = vtanh.f32 %v1259_v10  ;;  %v1192_v62 = vadd.f32 %v1128_v36, %v4673_v53  ;;  %v4676_v10 = vld [vmem:[#allocation16_spill] sm:$0xff] }
 0x1cd   : > { %v2181_v6 = vpop.eup %2180  ;;  %v1638_v26 = vmul.f32 %v3428_v32, %v1573_v49  ;;  %v1447_v50 = vmul.f32 %v2179_v34, %v2179_v34  ;;  %2198 = vtanh.f32 %v998_v63  ;;  %v935_v24 = vadd.f32 %v871_v17, %v4674_v58  ;;  %v4677_v63 = vld [vmem:[#allocation64_spill] sm:$0xff] }
 0x1ce   : > { %v1768_v22 = vadd.f32 %v3497_v46, %v1703_v27  ;;  %v1576_v23 = vmul.f32 %v2181_v6, %v2181_v6  ;;  %v1131_v37 = vmul.f32 %v3223_v47, %v692_v5  ;;  %v1258_v18 = vadd.f32 %v3359_v19, %v1192_v62  ;;  %v695_v27 = vpop.xlane.xlu0 %694 }
 0x1cf   : > { %v2183_v61 = vpop.eup %2182  ;;  %v1702_v33 = vadd.f32 %v1638_v26, %v1509_v29  ;;  %v1512_v31 = vmul.f32 %v4632_v14, %v1447_v50  ;;  %v870_v15 = vmul.f32 %v3208_v12, %v689_v55  ;;  %v1001_v21 = vadd.f32 %v4621_v1, %v935_v24  ;;  %v4678_v26 = vld [vmem:[#allocation5_spill] sm:$0xff] }
 0x1d0   : > { %v2185_v59 = vpop.eup %2184  ;;  %v1832_v4 = vand.u32 2147483647, %v1768_v22  ;;  %v1641_v0 = vmul.f32 %v3428_v32, %v1576_v23  ;;  %v1446_v51 = vmul.f32 %v2183_v61, %v2183_v61  ;;  %2200 = vtanh.f32 %v1258_v18  ;;  %v4679_v23 = vld [vmem:[#allocation65_spill] sm:$0xff] }
 0x1d1   : > { %v2187_v9 = vpop.eup %2186  ;;  %v1767_v13 = vadd.f32 %v3497_v46, %v1702_v33  ;;  %v1575_v16 = vmul.f32 %v2185_v59, %v2185_v59  ;;  %v1195_v44 = vadd.f32 %v1131_v37, %v4675_v52  ;;  %2202 = vtanh.f32 %v1001_v21 }
 0x1d2   : > { %v2189_v45 = vpop.eup %2188  ;;  %1897 = vst.msk [vmem:[%s3834_s8 + $0x118] sm:$0xff] %vm1861_vm2, %v1832_v4  ;;  %v1705_v56 = vadd.f32 %v1641_v0, %v1512_v31  ;;  %v1511_v40 = vmul.f32 %v4632_v14, %v1446_v51  ;;  %v1449_v20 = vmul.f32 %v2187_v9, %v2187_v9  ;;  %v934_v39 = vadd.f32 %v870_v15, %v4676_v10  ;;  %v704_v0 = vpop.xlane.xlu1 %703 }
 0x1d3   : > { %v1831_v57 = vand.u32 2147483647, %v1767_v13  ;;  %v1640_v38 = vmul.f32 %v3428_v32, %v1575_v16  ;;  %v1578_v60 = vmul.f32 %v2189_v45, %v2189_v45  ;;  %v1261_v35 = vadd.f32 %v3359_v19, %v1195_v44  ;;  %v701_v45 = vpop.xlane.xlu0 %700 }
 0x1d4   : > { %v1770_v54 = vadd.f32 %v3497_v46, %v1705_v56  ;;  %v1514_v8 = vmul.f32 %v4632_v14, %v1449_v20  ;;  %v1130_v42 = vmul.f32 %v3223_v47, %v689_v55  ;;  %v873_v3 = vmul.f32 %v3208_v12, %v698_v48 }
 0x1d5   : > { %1896 = vst.msk [vmem:[%s3834_s8 + $0x110] sm:$0xff] %vm1861_vm2, %v1831_v57  ;;  %v1704_v5 = vadd.f32 %v1640_v38, %v1511_v40  ;;  %v1643_v28 = vmul.f32 %v3428_v32, %v1578_v60  ;;  %2204 = vtanh.f32 %v1261_v35  ;;  %v2191_v7 = vpop.eup %2190  ;;  %v1000_v49 = vadd.f32 %v4621_v1, %v934_v39  ;;  %v4680_v60 = vld [vmem:[#allocation17_spill] sm:$0xff]  ;;  %v4681_v39 = vld [vmem:[#allocation66_spill] sm:$0xff] }
 0x1d6   : > { %v1834_v30 = vand.u32 2147483647, %v1770_v54  ;;  %v1194_v36 = vadd.f32 %v1130_v42, %v4677_v63  ;;  %v1133_v34 = vmul.f32 %v3223_v47, %v698_v48  ;;  %v1448_v6 = vmul.f32 %v2191_v7, %v2191_v7 }
 0x1d7   : > { %v2193_v29 = vpop.eup %2192  ;;  %v1769_v17 = vadd.f32 %v3497_v46, %v1704_v5  ;;  %v1707_v55 = vadd.f32 %v1643_v28, %v1514_v8  ;;  %v937_v50 = vadd.f32 %v873_v3, %v4678_v26  ;;  %2206 = vtanh.f32 %v1000_v49  ;;  %v4682_v5 = vld [vmem:[#allocation6_spill] sm:$0xff] }
 0x1d8   : > { %v2195_v53 = vpop.eup %2194  ;;  %1899 = vst.msk [vmem:[%s3834_s8 + $0x128] sm:$0xff] %vm1861_vm2, %v1834_v30  ;;  %v1577_v62 = vmul.f32 %v2193_v29, %v2193_v29  ;;  %v1260_v22 = vadd.f32 %v3359_v19, %v1194_v36  ;;  %v1197_v58 = vadd.f32 %v1133_v34, %v4679_v23  ;;  %v1513_v33 = vmul.f32 %v4632_v14, %v1448_v6  ;;  %v710_v36 = vpop.xlane.xlu1 %709 }
 0x1d9   : > { %v2197_v24 = vpop.eup %2196  ;;  %v1833_v37 = vand.u32 2147483647, %v1769_v17  ;;  %v1772_v61 = vadd.f32 %v3497_v46, %v1707_v55  ;;  %v1451_v31 = vmul.f32 %v2195_v53, %v2195_v53  ;;  %v1003_v4 = vadd.f32 %v4621_v1, %v937_v50  ;;  %v4683_v17 = vld [vmem:[#allocation67_spill] sm:$0xff] }
 0x1da   : > { %v2199_v18 = vpop.eup %2198  ;;  %v1642_v15 = vmul.f32 %v3428_v32, %v1577_v62  ;;  %v1580_v59 = vmul.f32 %v2197_v24, %v2197_v24  ;;  %2208 = vtanh.f32 %v1260_v22  ;;  %v1263_v13 = vadd.f32 %v3359_v19, %v1197_v58  ;;  %v4684_v53 = vld [vmem:[#allocation7_spill] sm:$0xff] }
 0x1db   : > { %1898 = vst.msk [vmem:[%s3834_s8 + $0x120] sm:$0xff] %vm1861_vm2, %v1833_v37  ;;  %v1836_v51 = vand.u32 2147483647, %v1772_v61  ;;  %v1516_v21 = vmul.f32 %v4632_v14, %v1451_v31  ;;  %v1450_v9 = vmul.f32 %v2199_v18, %v2199_v18  ;;  %2210 = vtanh.f32 %v1003_v4 }
 0x1dc   : > { %v1706_v16 = vadd.f32 %v1642_v15, %v1513_v33  ;;  %v1645_v52 = vmul.f32 %v3428_v32, %v1580_v59  ;;  %v872_v44 = vmul.f32 %v3208_v12, %v695_v27  ;;  %2212 = vtanh.f32 %v1263_v13  ;;  %v707_v33 = vpop.xlane.xlu0 %706 }
 0x1dd   : > { %1901 = vst.msk [vmem:[%s3834_s8 + $0x138] sm:$0xff] %vm1861_vm2, %v1836_v51  ;;  %v1515_v56 = vmul.f32 %v4632_v14, %v1450_v9  ;;  %v1132_v40 = vmul.f32 %v3223_v47, %v695_v27  ;;  %v875_v20 = vmul.f32 %v3208_v12, %v704_v0  ;;  %v2201_v48 = vpop.eup %2200  ;;  %v1135_v54 = vmul.f32 %v3223_v47, %v704_v0  ;;  %v4685_v51 = vld [vmem:[#allocation8_spill] sm:$0xff]  ;;  %v716_v9 = vpop.xlane.xlu1 %715 }
 0x1de   : > { %v1771_v57 = vadd.f32 %v3497_v46, %v1706_v16  ;;  %v1709_v38 = vadd.f32 %v1645_v52, %v1516_v21  ;;  %v936_v35 = vadd.f32 %v872_v44, %v4680_v60  ;;  %v2203_v8 = vpop.eup %2202  ;;  %v1579_v10 = vmul.f32 %v2201_v48, %v2201_v48  ;;  %v4686_v60 = vld [vmem:[#allocation68_spill] sm:$0xff] }
 0x1df   : > { %v1196_v42 = vadd.f32 %v1132_v40, %v4681_v39  ;;  %v939_v28 = vadd.f32 %v875_v20, %v4682_v5  ;;  %v874_v3 = vmul.f32 %v3208_v12, %v701_v45  ;;  %v1453_v49 = vmul.f32 %v2203_v8, %v2203_v8 }
 0x1e0   : > { %v1835_v7 = vand.u32 2147483647, %v1771_v57  ;;  %v1774_v30 = vadd.f32 %v3497_v46, %v1709_v38  ;;  %v1002_v63 = vadd.f32 %v4621_v1, %v936_v35  ;;  %v1644_v34 = vmul.f32 %v3428_v32, %v1579_v10 }
 0x1e1   : > { %v1262_v27 = vadd.f32 %v3359_v19, %v1196_v42  ;;  %v1005_v29 = vadd.f32 %v4621_v1, %v939_v28  ;;  %v1199_v55 = vadd.f32 %v1135_v54, %v4683_v17  ;;  %v1518_v50 = vmul.f32 %v4632_v14, %v1453_v49  ;;  %v4687_v49 = vld [vmem:[#allocation69_spill] sm:$0xff] }
 0x1e2   : > { %v2205_v6 = vpop.eup %2204  ;;  %1900 = vst.msk [vmem:[%s3834_s8 + $0x130] sm:$0xff] %vm1861_vm2, %v1835_v7  ;;  %v1838_v26 = vand.u32 2147483647, %v1774_v30  ;;  %2214 = vtanh.f32 %v1002_v63  ;;  %v938_v62 = vadd.f32 %v874_v3, %v4684_v53  ;;  %v1708_v22 = vadd.f32 %v1644_v34, %v1515_v56  ;;  %v713_v3 = vpop.xlane.xlu0 %712 }
 0x1e3   : > { %v1582_v23 = vmul.f32 %v2205_v6, %v2205_v6  ;;  %2216 = vtanh.f32 %v1262_v27  ;;  %v1265_v58 = vadd.f32 %v3359_v19, %v1199_v55  ;;  %v1134_v37 = vmul.f32 %v3223_v47, %v701_v45  ;;  %v4688_v27 = vld [vmem:[#allocation70_spill] sm:$0xff] }
 0x1e4   : > { %1903 = vst.msk [vmem:[%s3834_s8 + $0x148] sm:$0xff] %vm1861_vm2, %v1838_v26  ;;  %2218 = vtanh.f32 %v1005_v29  ;;  %v1004_v24 = vadd.f32 %v4621_v1, %v938_v62  ;;  %v877_v61 = vmul.f32 %v3208_v12, %v710_v36  ;;  %v2207_v31 = vpop.eup %2206  ;;  %v1773_v18 = vadd.f32 %v3497_v46, %v1708_v22 }
 0x1e5   : > { %v1647_v15 = vmul.f32 %v3428_v32, %v1582_v23  ;;  %2220 = vtanh.f32 %v1265_v58  ;;  %v1137_v59 = vmul.f32 %v3223_v47, %v710_v36  ;;  %v1452_v4 = vmul.f32 %v2207_v31, %v2207_v31  ;;  %v722_v36 = vpop.xlane.xlu1 %721  ;;  %v4689_v23 = vld [vmem:[#allocation71_spill] sm:$0xff]  ;;  %v4690_v31 = vld [vmem:[#allocation72_spill] sm:$0xff] }
 0x1e6   : > { %v1198_v0 = vadd.f32 %v1134_v37, %v3633_v41  ;;  %2222 = vtanh.f32 %v1004_v24  ;;  %v941_v21 = vadd.f32 %v877_v61, %v4685_v51  ;;  %v1837_v16 = vand.u32 2147483647, %v1773_v18 }
 0x1e7   : > { %v2209_v13 = vpop.eup %2208  ;;  %v1711_v52 = vadd.f32 %v1647_v15, %v1518_v50  ;;  %v1201_v44 = vadd.f32 %v1137_v59, %v3641_v25  ;;  %v876_v45 = vmul.f32 %v3208_v12, %v707_v33  ;;  %v1517_v56 = vmul.f32 %v4632_v14, %v1452_v4 }
 0x1e8   : > { %v1581_v40 = vmul.f32 %v2209_v13, %v2209_v13  ;;  %v1264_v20 = vadd.f32 %v3359_v19, %v1198_v0  ;;  %v1007_v48 = vadd.f32 %v4621_v1, %v941_v21  ;;  %v2211_v57 = vpop.eup %2210  ;;  %1902 = vst.msk [vmem:[%s3834_s8 + $0x140] sm:$0xff] %vm1861_vm2, %v1837_v16  ;;  %v1136_v25 = vmul.f32 %v3223_v47, %v707_v33  ;;  %v4691_v16 = vld [vmem:[#allocation73_spill] sm:$0xff] }
 0x1e9   : > { %v1776_v41 = vadd.f32 %v3497_v46, %v1711_v52  ;;  %v1267_v38 = vadd.f32 %v3359_v19, %v1201_v44  ;;  %v940_v35 = vadd.f32 %v876_v45, %v4686_v60  ;;  %v2213_v54 = vpop.eup %2212  ;;  %v1455_v10 = vmul.f32 %v2211_v57, %v2211_v57 }
 0x1ea   : > { %v1646_v8 = vmul.f32 %v3428_v32, %v1581_v40  ;;  %2224 = vtanh.f32 %v1264_v20  ;;  %v879_v39 = vmul.f32 %v3208_v12, %v716_v9  ;;  %v1584_v5 = vmul.f32 %v2213_v54, %v2213_v54  ;;  %v719_v20 = vpop.xlane.xlu0 %718 }
 0x1eb   : > { %v1840_v42 = vand.u32 2147483647, %v1776_v41  ;;  %2226 = vtanh.f32 %v1007_v48  ;;  %v1006_v28 = vadd.f32 %v4621_v1, %v940_v35  ;;  %v1520_v30 = vmul.f32 %v4632_v14, %v1455_v10  ;;  %v4692_v35 = vld [vmem:[#allocation74_spill] sm:$0xff] }
 0x1ec   : > { %v1710_v7 = vadd.f32 %v1646_v8, %v1517_v56  ;;  %2228 = vtanh.f32 %v1267_v38  ;;  %v1200_v63 = vadd.f32 %v1136_v25, %v4687_v49  ;;  %v1649_v34 = vmul.f32 %v3428_v32, %v1584_v5  ;;  %v728_v8 = vpop.xlane.xlu1 %727 }
 0x1ed   : > { %1905 = vst.msk [vmem:[%s3834_s8 + $0x158] sm:$0xff] %vm1861_vm2, %v1840_v42  ;;  %2230 = vtanh.f32 %v1006_v28  ;;  %v943_v29 = vadd.f32 %v879_v39, %v4688_v27  ;;  %v1139_v17 = vmul.f32 %v3223_v47, %v716_v9  ;;  %v878_v26 = vmul.f32 %v3208_v12, %v713_v3 }
 0x1ee   : > { %v1775_v55 = vadd.f32 %v3497_v46, %v1710_v7  ;;  %v1266_v6 = vadd.f32 %v3359_v19, %v1200_v63  ;;  %v1138_v50 = vmul.f32 %v3223_v47, %v713_v3  ;;  %v1713_v62 = vadd.f32 %v1649_v34, %v1520_v30  ;;  %v4693_v30 = vld [vmem:[#allocation75_spill] sm:$0xff] }
 0x1ef   : > { %v2215_v53 = vpop.eup %2214  ;;  %v1009_v22 = vadd.f32 %v4621_v1, %v943_v29  ;;  %v1203_v58 = vadd.f32 %v1139_v17, %v4689_v23  ;;  %v881_v24 = vmul.f32 %v3208_v12, %v722_v36  ;;  %v942_v18 = vadd.f32 %v878_v26, %v4690_v31  ;;  %v4695_v29 = vld [vmem:[#allocation77_spill] sm:$0xff] }
 0x1f0   : > { %v2217_v37 = vpop.eup %2216  ;;  %v1839_v61 = vand.u32 2147483647, %v1775_v55  ;;  %v1454_v33 = vmul.f32 %v2215_v53, %v2215_v53  ;;  %2232 = vtanh.f32 %v1266_v6  ;;  %v1778_v59 = vadd.f32 %v3497_v46, %v1713_v62 }
 0x1f1   : > { %v2219_v15 = vpop.eup %2218  ;;  %v1583_v4 = vmul.f32 %v2217_v37, %v2217_v37  ;;  %v1269_v0 = vadd.f32 %v3359_v19, %v1203_v58  ;;  %2234 = vtanh.f32 %v1009_v22  ;;  %v1008_v13 = vadd.f32 %v4621_v1, %v942_v18  ;;  %v725_v37 = vpop.xlane.xlu0 %724 }
 0x1f2   : > { %v2221_v51 = vpop.eup %2220  ;;  %1904 = vst.msk [vmem:[%s3834_s8 + $0x150] sm:$0xff] %vm1861_vm2, %v1839_v61  ;;  %v1519_v21 = vmul.f32 %v4632_v14, %v1454_v33  ;;  %v1457_v9 = vmul.f32 %v2219_v15, %v2219_v15  ;;  %v1202_v52 = vadd.f32 %v1138_v50, %v4691_v16  ;;  %v1842_v45 = vand.u32 2147483647, %v1778_v59 }
 0x1f3   : > { %v2223_v44 = vpop.eup %2222  ;;  %v1648_v56 = vmul.f32 %v3428_v32, %v1583_v4  ;;  %v1586_v40 = vmul.f32 %v2221_v51, %v2221_v51  ;;  %2236 = vtanh.f32 %v1269_v0  ;;  %v945_v25 = vadd.f32 %v881_v24, %v4692_v35  ;;  %v4696_v51 = vld [vmem:[#allocation78_spill] sm:$0xff] }
 0x1f4   : > { %v1522_v48 = vmul.f32 %v4632_v14, %v1457_v9  ;;  %v1456_v57 = vmul.f32 %v2223_v44, %v2223_v44  ;;  %v1268_v41 = vadd.f32 %v3359_v19, %v1202_v52  ;;  %2238 = vtanh.f32 %v1008_v13  ;;  %1907 = vst.msk [vmem:[%s3834_s8 + $0x168] sm:$0xff] %vm1861_vm2, %v1842_v45 }
 0x1f5   : > { %v1712_v38 = vadd.f32 %v1648_v56, %v1519_v21  ;;  %v1651_v60 = vmul.f32 %v3428_v32, %v1586_v40  ;;  %v1141_v54 = vmul.f32 %v3223_v47, %v722_v36  ;;  %v880_v39 = vmul.f32 %v3208_v12, %v719_v20  ;;  %v4694_v36 = vld [vmem:[#allocation76_spill] sm:$0xff] }
 0x1f6   : > { %v1521_v10 = vmul.f32 %v4632_v14, %v1456_v57  ;;  %2240 = vtanh.f32 %v1268_v41  ;;  %v1140_v42 = vmul.f32 %v3223_v47, %v719_v20  ;;  %v1011_v7 = vadd.f32 %v4621_v1, %v945_v25  ;;  %v4697_v20 = vld [vmem:[#allocation79_spill] sm:$0xff]  ;;  %v4698_v57 = vld [vmem:[#allocation80_spill] sm:$0xff] }
 0x1f7   : > { %v2225_v5 = vpop.eup %2224  ;;  %v1777_v28 = vadd.f32 %v3497_v46, %v1712_v38  ;;  %v1715_v3 = vadd.f32 %v1651_v60, %v1522_v48  ;;  %v1205_v49 = vadd.f32 %v1141_v54, %v4693_v30  ;;  %v944_v27 = vadd.f32 %v880_v39, %v4694_v36  ;;  %v734_v38 = vpop.xlane.xlu1 %733 }
 0x1f8   : > { %v2227_v63 = vpop.eup %2226  ;;  %v1585_v34 = vmul.f32 %v2225_v5, %v2225_v5  ;;  %v1204_v17 = vadd.f32 %v1140_v42, %v4695_v29  ;;  %v883_v55 = vmul.f32 %v3208_v12, %v728_v8  ;;  %2242 = vtanh.f32 %v1011_v7  ;;  %v731_v29 = vpop.xlane.xlu0 %730 }
 0x1f9   : > { %v2229_v6 = vpop.eup %2228  ;;  %v1841_v26 = vand.u32 2147483647, %v1777_v28  ;;  %v1780_v50 = vadd.f32 %v3497_v46, %v1715_v3  ;;  %v1459_v53 = vmul.f32 %v2227_v63, %v2227_v63  ;;  %v1271_v62 = vadd.f32 %v3359_v19, %v1205_v49 }
 0x1fa   : > { %v2231_v22 = vpop.eup %2230  ;;  %v1650_v23 = vmul.f32 %v3428_v32, %v1585_v34  ;;  %v1588_v58 = vmul.f32 %v2229_v6, %v2229_v6  ;;  %v1010_v24 = vadd.f32 %v4621_v1, %v944_v27  ;;  %v1270_v59 = vadd.f32 %v3359_v19, %v1204_v17  ;;  %v4699_v34 = vld [vmem:[#allocation81_spill] sm:$0xff] }
 0x1fb   : > { %1906 = vst.msk [vmem:[%s3834_s8 + $0x160] sm:$0xff] %vm1861_vm2, %v1841_v26  ;;  %v1844_v61 = vand.u32 2147483647, %v1780_v50  ;;  %v1524_v33 = vmul.f32 %v4632_v14, %v1459_v53  ;;  %v1458_v31 = vmul.f32 %v2231_v22, %v2231_v22  ;;  %2244 = vtanh.f32 %v1271_v62  ;;  %v4700_v53 = vld [vmem:[#allocation82_spill] sm:$0xff] }
 0x1fc   : > { %v1714_v18 = vadd.f32 %v1650_v23, %v1521_v10  ;;  %v1653_v15 = vmul.f32 %v3428_v32, %v1588_v58  ;;  %2246 = vtanh.f32 %v1010_v24  ;;  %v947_v21 = vadd.f32 %v883_v55, %v4696_v51  ;;  %v740_v23 = vpop.xlane.xlu1 %739 }
 0x1fd   : > { %v2233_v4 = vpop.eup %2232  ;;  %1909 = vst.msk [vmem:[%s3834_s8 + $0x178] sm:$0xff] %vm1861_vm2, %v1844_v61  ;;  %v1523_v0 = vmul.f32 %v4632_v14, %v1458_v31  ;;  %v1143_v9 = vmul.f32 %v3223_v47, %v728_v8  ;;  %v882_v13 = vmul.f32 %v3208_v12, %v725_v37  ;;  %2248 = vtanh.f32 %v1270_v59 }
 0x1fe   : > { %v2235_v16 = vpop.eup %2234  ;;  %v1779_v52 = vadd.f32 %v3497_v46, %v1714_v18  ;;  %v1717_v44 = vadd.f32 %v1653_v15, %v1524_v33  ;;  %v1587_v45 = vmul.f32 %v2233_v4, %v2233_v4  ;;  %v1013_v40 = vadd.f32 %v4621_v1, %v947_v21  ;;  %v4701_v15 = vld [vmem:[#allocation83_spill] sm:$0xff]  ;;  %v4702_v21 = vld [vmem:[#allocation84_spill] sm:$0xff] }
 0x1ff   : > { %v1461_v56 = vmul.f32 %v2235_v16, %v2235_v16  ;;  %v1207_v48 = vadd.f32 %v1143_v9, %v4697_v20  ;;  %v946_v41 = vadd.f32 %v882_v13, %v4698_v57  ;;  %v1142_v8 = vmul.f32 %v3223_v47, %v725_v37  ;;  %v4703_v13 = vld [vmem:[#allocation85_spill] sm:$0xff] }
 0x200   : > { %v2237_v60 = vpop.eup %2236  ;;  %v1843_v35 = vand.u32 2147483647, %v1779_v52  ;;  %v1782_v25 = vadd.f32 %v3497_v46, %v1717_v44  ;;  %v1652_v54 = vmul.f32 %v3428_v32, %v1587_v45  ;;  %2250 = vtanh.f32 %v1013_v40 }
 0x201   : > { %v2239_v10 = vpop.eup %2238  ;;  %v1526_v39 = vmul.f32 %v4632_v14, %v1461_v56  ;;  %v1590_v42 = vmul.f32 %v2237_v60, %v2237_v60  ;;  %v1273_v5 = vadd.f32 %v3359_v19, %v1207_v48  ;;  %v1012_v30 = vadd.f32 %v4621_v1, %v946_v41 }
 0x202   : > { %1908 = vst.msk [vmem:[%s3834_s8 + $0x170] sm:$0xff] %vm1861_vm2, %v1843_v35  ;;  %v1846_v28 = vand.u32 2147483647, %v1782_v25  ;;  %v1716_v3 = vadd.f32 %v1652_v54, %v1523_v0  ;;  %v1460_v7 = vmul.f32 %v2239_v10, %v2239_v10  ;;  %v1206_v36 = vadd.f32 %v1142_v8, %v4699_v34  ;;  %v737_v25 = vpop.xlane.xlu0 %736  ;;  %v746_v54 = vpop.xlane.xlu1 %745 }
 0x203   : > { %v2241_v49 = vpop.eup %2240  ;;  %v1655_v63 = vmul.f32 %v3428_v32, %v1590_v42  ;;  %2252 = vtanh.f32 %v1273_v5  ;;  %v885_v27 = vmul.f32 %v3208_v12, %v734_v38  ;;  %v1145_v22 = vmul.f32 %v3223_v47, %v734_v38  ;;  %v4704_v5 = vld [vmem:[#allocation86_spill] sm:$0xff] }
 0x204   : > { %1911 = vst.msk [vmem:[%s3834_s8 + $0x188] sm:$0xff] %vm1861_vm2, %v1846_v28  ;;  %v1781_v17 = vadd.f32 %v3497_v46, %v1716_v3  ;;  %v1525_v55 = vmul.f32 %v4632_v14, %v1460_v7  ;;  %v1589_v6 = vmul.f32 %v2241_v49, %v2241_v49  ;;  %2254 = vtanh.f32 %v1012_v30 }
 0x205   : > { %v1719_v26 = vadd.f32 %v1655_v63, %v1526_v39  ;;  %v1272_v50 = vadd.f32 %v3359_v19, %v1206_v36  ;;  %v949_v62 = vadd.f32 %v885_v27, %v4700_v53  ;;  %v884_v37 = vmul.f32 %v3208_v12, %v731_v29  ;;  %v2243_v33 = vpop.eup %2242 }
 0x206   : > { %v1845_v58 = vand.u32 2147483647, %v1781_v17  ;;  %v1654_v24 = vmul.f32 %v3428_v32, %v1589_v6  ;;  %v1144_v61 = vmul.f32 %v3223_v47, %v731_v29  ;;  %v1209_v59 = vadd.f32 %v1145_v22, %v4701_v15  ;;  %v4705_v17 = vld [vmem:[#allocation87_spill] sm:$0xff] }
 0x207   : > { %v1784_v31 = vadd.f32 %v3497_v46, %v1719_v26  ;;  %2256 = vtanh.f32 %v1272_v50  ;;  %v1015_v18 = vadd.f32 %v4621_v1, %v949_v62  ;;  %v1463_v51 = vmul.f32 %v2243_v33, %v2243_v33  ;;  %v4706_v50 = vld [vmem:[#allocation88_spill] sm:$0xff]  ;;  %v4707_v62 = vld [vmem:[#allocation89_spill] sm:$0xff] }
 0x208   : > { %v2245_v4 = vpop.eup %2244  ;;  %1910 = vst.msk [vmem:[%s3834_s8 + $0x180] sm:$0xff] %vm1861_vm2, %v1845_v58  ;;  %v1718_v0 = vadd.f32 %v1654_v24, %v1525_v55  ;;  %v948_v9 = vadd.f32 %v884_v37, %v4702_v21  ;;  %v1208_v16 = vadd.f32 %v1144_v61, %v4703_v13  ;;  %v1275_v56 = vadd.f32 %v3359_v19, %v1209_v59 }
 0x209   : > { %v2247_v52 = vpop.eup %2246  ;;  %v1848_v44 = vand.u32 2147483647, %v1784_v31  ;;  %v1592_v45 = vmul.f32 %v2245_v4, %v2245_v4  ;;  %2258 = vtanh.f32 %v1015_v18  ;;  %v1528_v20 = vmul.f32 %v4632_v14, %v1463_v51  ;;  %v743_v4 = vpop.xlane.xlu0 %742 }
 0x20a   : > { %v1783_v40 = vadd.f32 %v3497_v46, %v1718_v0  ;;  %v1462_v48 = vmul.f32 %v2247_v52, %v2247_v52  ;;  %v1014_v57 = vadd.f32 %v4621_v1, %v948_v9  ;;  %v2249_v41 = vpop.eup %2248  ;;  %2260 = vtanh.f32 %v1275_v56  ;;  %v752_v9 = vpop.xlane.xlu1 %751 }
 0x20b   : > { %1913 = vst.msk [vmem:[%s3834_s8 + $0x198] sm:$0xff] %vm1861_vm2, %v1848_v44  ;;  %v1657_v38 = vmul.f32 %v3428_v32, %v1592_v45  ;;  %v1274_v60 = vadd.f32 %v3359_v19, %v1208_v16  ;;  %v887_v35 = vmul.f32 %v3208_v12, %v740_v23  ;;  %v1591_v39 = vmul.f32 %v2249_v41, %v2249_v41 }
 0x20c   : > { %v1847_v8 = vand.u32 2147483647, %v1783_v40  ;;  %v1527_v10 = vmul.f32 %v4632_v14, %v1462_v48  ;;  %2262 = vtanh.f32 %v1014_v57  ;;  %v1147_v3 = vmul.f32 %v3223_v47, %v740_v23  ;;  %v4708_v23 = vld [vmem:[#allocation90_spill] sm:$0xff]  ;;  %v4709_v48 = vld [vmem:[#allocation91_spill] sm:$0xff] }
 0x20d   : > { %v1721_v42 = vadd.f32 %v1657_v38, %v1528_v20  ;;  %2264 = vtanh.f32 %v1274_v60  ;;  %v951_v28 = vadd.f32 %v887_v35, %v4704_v5  ;;  %v2251_v7 = vpop.eup %2250  ;;  %v1656_v30 = vmul.f32 %v3428_v32, %v1591_v39 }
 0x20e   : > { %1912 = vst.msk [vmem:[%s3834_s8 + $0x190] sm:$0xff] %vm1861_vm2, %v1847_v8  ;;  %v886_v49 = vmul.f32 %v3208_v12, %v737_v25  ;;  %v1146_v63 = vmul.f32 %v3223_v47, %v737_v25  ;;  %v889_v34 = vmul.f32 %v3208_v12, %v746_v54  ;;  %v1465_v27 = vmul.f32 %v2251_v7, %v2251_v7 }
 0x20f   : > { %v1786_v36 = vadd.f32 %v3497_v46, %v1721_v42  ;;  %v1017_v29 = vadd.f32 %v4621_v1, %v951_v28  ;;  %v1211_v55 = vadd.f32 %v1147_v3, %v4705_v17  ;;  %v1720_v26 = vadd.f32 %v1656_v30, %v1527_v10  ;;  %v4711_v42 = vld [vmem:[#allocation13_spill] sm:$0xff] }
 0x210   : > { %v2253_v6 = vpop.eup %2252  ;;  %v950_v53 = vadd.f32 %v886_v49, %v4706_v50  ;;  %v1210_v22 = vadd.f32 %v1146_v63, %v4707_v62  ;;  %v953_v58 = vadd.f32 %v889_v34, %v4708_v23  ;;  %v1530_v61 = vmul.f32 %v4632_v14, %v1465_v27  ;;  %v4712_v28 = vld [vmem:[#allocation93_spill] sm:$0xff]  ;;  %v749_v27 = vpop.xlane.xlu0 %748 }
 0x211   : > { %v2255_v24 = vpop.eup %2254  ;;  %v1850_v37 = vand.u32 2147483647, %v1786_v36  ;;  %v1594_v33 = vmul.f32 %v2253_v6, %v2253_v6  ;;  %v1277_v31 = vadd.f32 %v3359_v19, %v1211_v55  ;;  %v1785_v18 = vadd.f32 %v3497_v46, %v1720_v26 }
 0x212   : > { %v1464_v15 = vmul.f32 %v2255_v24, %v2255_v24  ;;  %2266 = vtanh.f32 %v1017_v29  ;;  %v1016_v59 = vadd.f32 %v4621_v1, %v950_v53  ;;  %v1276_v51 = vadd.f32 %v3359_v19, %v1210_v22 }
 0x213   : > { %1915 = vst.msk [vmem:[%s3834_s8 + $0x1a8] sm:$0xff] %vm1861_vm2, %v1850_v37  ;;  %v1659_v0 = vmul.f32 %v3428_v32, %v1594_v33  ;;  %2268 = vtanh.f32 %v1277_v31  ;;  %v1019_v21 = vadd.f32 %v4621_v1, %v953_v58  ;;  %v1849_v16 = vand.u32 2147483647, %v1785_v18 }
 0x214   : > { %v2257_v13 = vpop.eup %2256  ;;  %v1529_v52 = vmul.f32 %v4632_v14, %v1464_v15  ;;  %2270 = vtanh.f32 %v1016_v59  ;;  %v1149_v44 = vmul.f32 %v3223_v47, %v746_v54  ;;  %v888_v40 = vmul.f32 %v3208_v12, %v743_v4  ;;  %v4710_v54 = vld [vmem:[#allocation92_spill] sm:$0xff] }
 0x215   : > { %v1723_v45 = vadd.f32 %v1659_v0, %v1530_v61  ;;  %v1593_v56 = vmul.f32 %v2257_v13, %v2257_v13  ;;  %2272 = vtanh.f32 %v1276_v51  ;;  %1914 = vst.msk [vmem:[%s3834_s8 + $0x1a0] sm:$0xff] %vm1861_vm2, %v1849_v16  ;;  %v1148_v41 = vmul.f32 %v3223_v47, %v743_v4 }
 0x216   : > { %v2259_v20 = vpop.eup %2258  ;;  %v1213_v57 = vadd.f32 %v1149_v44, %v4709_v48  ;;  %2274 = vtanh.f32 %v1019_v21  ;;  %v891_v38 = vmul.f32 %v3208_v12, %v752_v9  ;;  %v952_v8 = vadd.f32 %v888_v40, %v4710_v54 }
 0x217   : > { %v1788_v60 = vadd.f32 %v3497_v46, %v1723_v45  ;;  %v1658_v35 = vmul.f32 %v3428_v32, %v1593_v56  ;;  %v1467_v25 = vmul.f32 %v2259_v20, %v2259_v20  ;;  %v2261_v10 = vpop.eup %2260  ;;  %v1212_v5 = vadd.f32 %v1148_v41, %v4711_v42 }
 0x218   : > { %v1279_v39 = vadd.f32 %v3359_v19, %v1213_v57  ;;  %v955_v3 = vadd.f32 %v891_v38, %v4712_v28  ;;  %v1151_v7 = vmul.f32 %v3223_v47, %v752_v9  ;;  %v1596_v36 = vmul.f32 %v2261_v10, %v2261_v10 }
 0x219   : > { %v2263_v30 = vpop.eup %2262  ;;  %v1852_v49 = vand.u32 2147483647, %v1788_v60  ;;  %v1722_v63 = vadd.f32 %v1658_v35, %v1529_v52  ;;  %v1532_v34 = vmul.f32 %v4632_v14, %v1467_v25  ;;  %v1018_v55 = vadd.f32 %v4621_v1, %v952_v8 }
 0x21a   : > { %v2265_v29 = vpop.eup %2264  ;;  %v1466_v17 = vmul.f32 %v2263_v30, %v2263_v30  ;;  %2276 = vtanh.f32 %v1279_v39  ;;  %v1278_v6 = vadd.f32 %v3359_v19, %v1212_v5  ;;  %v1661_v50 = vmul.f32 %v3428_v32, %v1596_v36 }
 0x21b   : > { %1917 = vst.msk [vmem:[%s3834_s8 + $0x1b8] sm:$0xff] %vm1861_vm2, %v1852_v49  ;;  %v1787_v26 = vadd.f32 %v3497_v46, %v1722_v63  ;;  %v1595_v53 = vmul.f32 %v2265_v29, %v2265_v29  ;;  %v1021_v62 = vadd.f32 %v4621_v1, %v955_v3  ;;  %2278 = vtanh.f32 %v1018_v55 }
 0x21c   : > { %v1531_v22 = vmul.f32 %v4632_v14, %v1466_v17  ;;  %v1215_v23 = vadd.f32 %v1151_v7, %v3765_v2  ;;  %v890_v58 = vmul.f32 %v3208_v12, %v749_v27  ;;  %v1725_v37 = vadd.f32 %v1661_v50, %v1532_v34 }
 0x21d   : > { %v1851_v24 = vand.u32 2147483647, %v1787_v26  ;;  %v1660_v61 = vmul.f32 %v3428_v32, %v1595_v53  ;;  %2280 = vtanh.f32 %v1278_v6  ;;  %v1150_v18 = vmul.f32 %v3223_v47, %v749_v27 }
 0x21e   : > { %v1281_v33 = vadd.f32 %v3359_v19, %v1215_v23  ;;  %2282 = vtanh.f32 %v1021_v62  ;;  %v954_v31 = vadd.f32 %v890_v58, %v3782_v43  ;;  %v1790_v59 = vadd.f32 %v3497_v46, %v1725_v37 }
 0x21f   : > { %v2267_v15 = vpop.eup %2266  ;;  %1916 = vst.msk [vmem:[%s3834_s8 + $0x1b0] sm:$0xff] %vm1861_vm2, %v1851_v24  ;;  %v1724_v2 = vadd.f32 %v1660_v61, %v1531_v22  ;;  %v1214_v51 = vadd.f32 %v1150_v18, %v3786_v11 }
 0x220   : > { %v2269_v12 = vpop.eup %2268  ;;  %v1469_v4 = vmul.f32 %v2267_v15, %v2267_v15  ;;  %2284 = vtanh.f32 %v1281_v33  ;;  %v1020_v0 = vadd.f32 %v4621_v1, %v954_v31  ;;  %v1854_v9 = vand.u32 2147483647, %v1790_v59 }
 0x221   : > { %v2271_v21 = vpop.eup %2270  ;;  %v1789_v43 = vadd.f32 %v3497_v46, %v1724_v2  ;;  %v1598_v47 = vmul.f32 %v2269_v12, %v2269_v12  ;;  %v1280_v44 = vadd.f32 %v3359_v19, %v1214_v51 }
 0x222   : > { %v2273_v13 = vpop.eup %2272  ;;  %v1534_v16 = vmul.f32 %v4632_v14, %v1469_v4  ;;  %v1468_v52 = vmul.f32 %v2271_v21, %v2271_v21  ;;  %2286 = vtanh.f32 %v1020_v0  ;;  %1919 = vst.msk [vmem:[%s3834_s8 + $0x1c8] sm:$0xff] %vm1861_vm2, %v1854_v9 }
 0x223   : > { %v2275_v45 = vpop.eup %2274  ;;  %v1853_v56 = vand.u32 2147483647, %v1789_v43  ;;  %v1663_v1 = vmul.f32 %v3428_v32, %v1598_v47  ;;  %v1597_v11 = vmul.f32 %v2273_v13, %v2273_v13  ;;  %2288 = vtanh.f32 %v1280_v44 }
 0x224   : > { %v1533_v40 = vmul.f32 %v4632_v14, %v1468_v52  ;;  %v1471_v20 = vmul.f32 %v2275_v45, %v2275_v45 }
 0x225   : > { %1918 = vst.msk [vmem:[%s3834_s8 + $0x1c0] sm:$0xff] %vm1861_vm2, %v1853_v56  ;;  %v1727_v48 = vadd.f32 %v1663_v1, %v1534_v16  ;;  %v1662_v57 = vmul.f32 %v3428_v32, %v1597_v11 }
 0x226   : > { %v1536_v60 = vmul.f32 %v4632_v14, %v1471_v20 }
 0x227   : > { %v2277_v41 = vpop.eup %2276  ;;  %v1792_v19 = vadd.f32 %v3497_v46, %v1727_v48  ;;  %v1726_v38 = vadd.f32 %v1662_v57, %v1533_v40 }
 0x228   : > { %v1600_v35 = vmul.f32 %v2277_v41, %v2277_v41  ;;  %v2279_v25 = vpop.eup %2278 }
 0x229   : > { %v1856_v54 = vand.u32 2147483647, %v1792_v19  ;;  %v1791_v8 = vadd.f32 %v3497_v46, %v1726_v38  ;;  %v1470_v42 = vmul.f32 %v2279_v25, %v2279_v25 }
 0x22a   : > { %v2281_v10 = vpop.eup %2280  ;;  %v1665_v39 = vmul.f32 %v3428_v32, %v1600_v35 }
 0x22b   : > { %v2283_v5 = vpop.eup %2282  ;;  %1921 = vst.msk [vmem:[%s3834_s8 + $0x1d8] sm:$0xff] %vm1861_vm2, %v1856_v54  ;;  %v1855_v28 = vand.u32 2147483647, %v1791_v8  ;;  %v1599_v3 = vmul.f32 %v2281_v10, %v2281_v10  ;;  %v1535_v30 = vmul.f32 %v4632_v14, %v1470_v42 }
 0x22c   : > { %v1729_v7 = vadd.f32 %v1665_v39, %v1536_v60  ;;  %v1473_v49 = vmul.f32 %v2283_v5, %v2283_v5 }
 0x22d   : > { %v2285_v63 = vpop.eup %2284  ;;  %1920 = vst.msk [vmem:[%s3834_s8 + $0x1d0] sm:$0xff] %vm1861_vm2, %v1855_v28  ;;  %v1664_v34 = vmul.f32 %v3428_v32, %v1599_v3 }
 0x22e   : > { %v1794_v36 = vadd.f32 %v3497_v46, %v1729_v7  ;;  %v1538_v27 = vmul.f32 %v4632_v14, %v1473_v49  ;;  %v1602_v29 = vmul.f32 %v2285_v63, %v2285_v63 }
 0x22f   : > { %v2287_v17 = vpop.eup %2286  ;;  %v1728_v55 = vadd.f32 %v1664_v34, %v1535_v30 }
 0x230   : > { %v1858_v6 = vand.u32 2147483647, %v1794_v36  ;;  %v1667_v26 = vmul.f32 %v3428_v32, %v1602_v29  ;;  %v1472_v50 = vmul.f32 %v2287_v17, %v2287_v17  ;;  %v2289_v53 = vpop.eup %2288 }
 0x231   : > { %v1793_v62 = vadd.f32 %v3497_v46, %v1728_v55  ;;  %v1601_v58 = vmul.f32 %v2289_v53, %v2289_v53 }
 0x232   : > { %1923 = vst.msk [vmem:[%s3834_s8 + $0x1e8] sm:$0xff] %vm1861_vm2, %v1858_v6  ;;  %v1731_v22 = vadd.f32 %v1667_v26, %v1538_v27  ;;  %v1537_v23 = vmul.f32 %v4632_v14, %v1472_v50 }
 0x233   : > { %v1857_v24 = vand.u32 2147483647, %v1793_v62  ;;  %v1666_v61 = vmul.f32 %v3428_v32, %v1601_v58 }
 0x234   : > { %v1796_v37 = vadd.f32 %v3497_v46, %v1731_v22 }
 0x235   : > { %1922 = vst.msk [vmem:[%s3834_s8 + $0x1e0] sm:$0xff] %vm1861_vm2, %v1857_v24  ;;  %v1730_v31 = vadd.f32 %v1666_v61, %v1537_v23 }
 0x236   : > { %v1860_v33 = vand.u32 2147483647, %v1796_v37 }
 0x237   : > { %v1795_v18 = vadd.f32 %v3497_v46, %v1730_v31 }
 0x238   : > { %1925 = vst.msk [vmem:[%s3834_s8 + $0x1f8] sm:$0xff] %vm1861_vm2, %v1860_v33 }
 0x239   : > { %v1859_v15 = vand.u32 2147483647, %v1795_v18 }
 0x23b   : > { %1924 = vst.msk [vmem:[%s3834_s8 + $0x1f0] sm:$0xff] %vm1861_vm2, %v1859_v15 }
 0x23c PF: > { %s13_s9 = sadd.s32 1, %s2315_s9  }
 0x23d   : > { %p10_p1 = scmp.ge.s32.totalorder %s13_s9, 4  }
 0x23f   :  { %12 = sbr.rel (!%p10_p1) target bundleno = 1 (0x1), region = 63 }
 0x244   :  { %1948 = vsyncpa [#allocation3], 1 }
 0x245   :  { %1950 = vsyncpa [#allocation3 + $0x1], 1 }

</bundles_post_ra>
